<compile_context>
chip_gen: v7x
topology: tpu7x:2x2x1
jax: 0.10.0
libtpu: 0.0.40
codegen_flags: <defaults>
</compile_context>

<pallas_src>
import functools
import numpy as np
import jax
import jax.numpy as jnp
from jax import lax
from jax.experimental import pallas as pl
from jax.experimental.pallas import tpu as pltpu

HIDDEN = 32                    # hidden_dim == embed_dim
CONTEXT = 16                   # context_dim
HEADS = 8
HEAD_DIM = HIDDEN // HEADS     # 4
SEQ = 8                        # seq len == context len (required by ref einsum)
BATCH = 2
EPS = 1e-5                     # torch.nn.LayerNorm default eps


# ---------------------------------------------------------------------------
# In-kernel building blocks
# ---------------------------------------------------------------------------
def _layer_norm(h, g, b):
    mu = jnp.mean(h, axis=-1, keepdims=True)
    var = jnp.mean((h - mu) ** 2, axis=-1, keepdims=True)   # biased var (torch)
    return (h - mu) * lax.rsqrt(var + EPS) * g + b           # rsqrt -> EUP slot


def _erf(x):
    # Abramowitz & Stegun 7.1.26, |error| <= 1.5e-7.  Uses only exp / mul /
    # add / div / where, all of which have guaranteed Mosaic lowerings.
    p = np.float32(0.3275911)
    a1 = np.float32(0.254829592)
    a2 = np.float32(-0.284496736)
    a3 = np.float32(1.421413741)
    a4 = np.float32(-1.453152027)
    a5 = np.float32(1.061405429)
    ax = jnp.abs(x)
    t = 1.0 / (1.0 + p * ax)
    poly = ((((a5 * t + a4) * t + a3) * t + a2) * t + a1) * t
    y = 1.0 - poly * jnp.exp(-ax * ax)
    return jnp.where(x < 0, -y, y)


def _gelu_exact(x):
    # torch.nn.GELU() default (approximate='none'): 0.5*x*(1+erf(x/sqrt(2)))
    return 0.5 * x * (1.0 + _erf(x * np.float32(1.0 / np.sqrt(2.0))))


# ---------------------------------------------------------------------------
# Kernel: whole block, one grid step, batch folded into rows.
# ---------------------------------------------------------------------------
def _transformer_block_kernel(x_ref, ctx_ref, w_self_ref, w_cross_ref,
                              w1_ref, w2_ref, consts_ref, small_ref, o_ref,
                              *, d, dc, nh):
    hd = d // nh
    x = x_ref[...]        # (B*T, D)
    ctx = ctx_ref[...]    # (B*S, Dc)   with B*S == B*T (required by ref einsum)

    # ---- small (1, N) params: one per row, column offset 0 -----------------
    g1 = small_ref[0:1, :d]
    b1 = small_ref[1:2, :d]
    g2 = small_ref[2:3, :d]
    b2 = small_ref[3:4, :d]
    g3 = small_ref[4:5, :d]
    b3 = small_ref[5:6, :d]
    bos = small_ref[6:7, :d]
    boc = small_ref[7:8, :d]
    bf2 = small_ref[8:9, :d]
    bf1 = small_ref[9:10, :]                      # (1, 4D)

    # ---- structural 0/1 constants for the lane-tiled attention -------------
    bpool = consts_ref[0:d, :]                    # sums each head_dim block
    msum = consts_ref[d:2 * d, :]                 # head-sum of V, tiled over heads
    r_list = [consts_ref[2 * d + i * d:2 * d + (i + 1) * d, :]   # head-block
              for i in range(nh)]                                # permutations

    # ---- attention weights (row-stacked, values unchanged) -----------------
    wqs = w_self_ref[0:d, :]
    wks = w_self_ref[d:2 * d, :]
    wvs = w_self_ref[2 * d:3 * d, :]
    wos = w_self_ref[3 * d:4 * d, :]
    wqc = w_cross_ref[0:d, :]
    wkc = w_cross_ref[d:d + dc, :]
    wvc = w_cross_ref[d + dc:d + 2 * dc, :]
    woc = w_cross_ref[d + 2 * dc:2 * d + 2 * dc, :]

    inv_sqrt_hd = np.float32(1.0 / np.sqrt(hd))

    def attention(tok, kv, wq, wk, wv, wo, bo):
        # Literal head-mixing attention of the reference module, kept 2-D:
        #   s[delta][p, qh*hd + *] = <Q_head(qh), K_head((qh+delta)%nh)>(p)/sqrt(hd)
        # i.e. the full (pos, query-head, key-head) score tensor, lane-tiled.
        q = jnp.dot(tok, wq, preferred_element_type=jnp.float32)   # (N, D)
        k = jnp.dot(kv, wk, preferred_element_type=jnp.float32)    # (N, D)
        v = jnp.dot(kv, wv, preferred_element_type=jnp.float32)    # (N, D)

        s = []
        for r_d in r_list:                                   # unrolled, nh=8
            k_rot = jnp.dot(k, r_d, preferred_element_type=jnp.float32)
            s.append(jnp.dot(q * k_rot, bpool,
                             preferred_element_type=jnp.float32) * inv_sqrt_hd)

        # softmax over key-heads — elementwise across the 8 lane-tiled arrays,
        # no cross-lane reductions needed.
        m = s[0]
        for si in s[1:]:
            m = jnp.maximum(m, si)
        e = [jnp.exp(si - m) for si in s]
        esum = e[0]
        for ei in e[1:]:
            esum = esum + ei
        inv_esum = pl.reciprocal(esum, approx=False)
        a_rowsum = e[0] * inv_esum                  # sum_k softmax(scores)_k
        for ei in e[1:]:
            a_rowsum = a_rowsum + ei * inv_esum

        # einsum('bqhk,bvhd->bqhd', A, V) == rowsum_k(A) * headsum_v(V)
        # (k and v are disjoint summed indices -> exact factorisation).
        vsum_tiled = jnp.dot(v, msum, preferred_element_type=jnp.float32)
        ctx_vec = a_rowsum * vsum_tiled             # (N, D), heads concatenated
        return jnp.dot(ctx_vec, wo, preferred_element_type=jnp.float32) + bo

    # x = attn_self(norm1(x)) + x
    h = _layer_norm(x, g1, b1)
    x = attention(h, h, wqs, wks, wvs, wos, bos) + x

    # x = attn_cross(norm2(x), context) + x
    h = _layer_norm(x, g2, b2)
    x = attention(h, ctx, wqc, wkc, wvc, woc, boc) + x

    # x = ffn(norm3(x)) + x    (Linear -> GELU -> Linear -> GELU)
    h = _layer_norm(x, g3, b3)
    f = _gelu_exact(jnp.dot(h, w1_ref[...], preferred_element_type=jnp.float32) + bf1)
    f = _gelu_exact(jnp.dot(f, w2_ref[...], preferred_element_type=jnp.float32) + bf2)

    o_ref[...] = (f + x).astype(o_ref.dtype)


# ---------------------------------------------------------------------------
# Wrapper: host-side packing (no weight arithmetic) + single pallas_call.
# ---------------------------------------------------------------------------
def transformer_block(x, context, params, *, num_heads):
    B, T, D = x.shape
    Bc, S, Dc = context.shape
    assert B == Bc, "batch dims must match"
    assert T == S, "reference head-mixing einsum requires seq_len == context_len"
    assert D % num_heads == 0
    nh = num_heads
    hd = D // nh
    f32 = jnp.float32

    (g1, b1, wqs, wks, wvs, wos, bos,
     g2, b2, wqc, wkc, wvc, woc, boc,
     g3, b3, w1, bf1, w2, bf2) = params

    # Row-stack the attention weights (values unchanged).
    w_self = jnp.concatenate([wqs, wks, wvs, wos], axis=0).astype(f32)    # (4D, D)
    w_cross = jnp.concatenate([wqc, wkc, wvc, woc], axis=0).astype(f32)   # (2D+2Dc, D)

    # Structural 0/1 constants: block-pool, head-sum-and-tile, and the nh
    # head-block circular permutations used to lane-tile the score tensor.
    eye_hd = np.eye(hd, dtype=np.float32)
    bpool = np.kron(np.eye(nh, dtype=np.float32), np.ones((hd, hd), np.float32))
    msum = np.tile(eye_hd, (nh, nh))
    r_blocks = []
    for delta in range(nh):
        perm = np.zeros((D, D), np.float32)
        for q in range(nh):
            src = ((q + delta) % nh) * hd
            perm[src:src + hd, q * hd:(q + 1) * hd] = eye_hd
        r_blocks.append(perm)
    consts = jnp.asarray(np.concatenate([bpool, msum] + r_blocks, axis=0))  # ((2+nh)D, D)

    # Pack all (1, N) params into one lane-aligned (16, 4D) slab (row each).
    F = 4 * D
    small = jnp.zeros((16, F), f32)
    for row, vec in enumerate([g1, b1, g2, b2, g3, b3, bos, boc, bf2]):
        small = small.at[row, :vec.shape[-1]].set(vec.reshape(-1).astype(f32))
    small = small.at[9, :F].set(bf1.reshape(-1).astype(f32))

    # Fold batch into rows: every op in the block is token-local.
    x2 = x.reshape(B * T, D).astype(f32)
    c2 = context.reshape(B * S, Dc).astype(f32)

    kernel = functools.partial(_transformer_block_kernel, d=D, dc=Dc, nh=nh)
    full2d = lambda shape: pl.BlockSpec(shape, lambda i: (0, 0))

    out2 = pl.pallas_call(
        kernel,
        out_shape=jax.ShapeDtypeStruct((B * T, D), f32),
        grid=(1,),                                    # single step, all in VMEM
        in_specs=[
            full2d((B * T, D)),
            full2d((B * S, Dc)),
            full2d(tuple(w_self.shape)),
            full2d(tuple(w_cross.shape)),
            full2d(tuple(w1.shape)),
            full2d(tuple(w2.shape)),
            full2d(tuple(consts.shape)),
            full2d(tuple(small.shape)),
        ],
        out_specs=full2d((B * T, D)),
        compiler_params=pltpu.CompilerParams(dimension_semantics=("arbitrary",)),
    )(x2, c2, w_self, w_cross, w1.astype(f32), w2.astype(f32), consts, small)

    return out2.reshape(B, T, D)


# ---------------------------------------------------------------------------
# Pure-JAX reference (literal translation of the PyTorch forward)
# ---------------------------------------------------------------------------
def reference_transformer_block(x, context, params, *, num_heads):
    (g1, b1, wqs, wks, wvs, wos, bos,
     g2, b2, wqc, wkc, wvc, woc, boc,
     g3, b3, w1, bf1, w2, bf2) = params
    D = x.shape[-1]
    hd = D // num_heads

    def ln(h, g, b):
        mu = jnp.mean(h, axis=-1, keepdims=True)
        var = jnp.mean((h - mu) ** 2, axis=-1, keepdims=True)
        return (h - mu) / jnp.sqrt(var + EPS) * g + b

    def attn(tok, kv, wq, wk, wv, wo, bo):
        B = tok.shape[0]
        Q, K, V = tok @ wq, kv @ wk, kv @ wv
        Qr = Q.reshape(B, -1, num_heads, hd).transpose(0, 2, 1, 3)
        Kr = K.reshape(B, -1, num_heads, hd).transpose(0, 2, 1, 3)
        Vr = V.reshape(B, -1, num_heads, hd).transpose(0, 2, 1, 3)
        s = jnp.einsum('bqhd,bkhd->bqhk', Qr, Kr)
        a = jax.nn.softmax(s / hd ** 0.5, axis=-1)
        c = jnp.einsum('bqhk,bvhd->bqhd', a, Vr)
        c = c.transpose(0, 2, 1, 3).reshape(B, -1, num_heads * hd)
        return c @ wo + bo

    h = ln(x, g1, b1)
    x = attn(h, h, wqs, wks, wvs, wos, bos) + x
    h = ln(x, g2, b2)
    x = attn(h, context, wqc, wkc, wvc, woc, boc) + x
    h = ln(x, g3, b3)
    f = jax.nn.gelu(h @ w1 + bf1, approximate=False)
    f = jax.nn.gelu(f @ w2 + bf2, approximate=False)
    return f + x


# ---------------------------------------------------------------------------
# Deterministic parameter init (synthetic; shapes follow the module __init__)
# ---------------------------------------------------------------------------
def init_params(key):
    ks = jax.random.split(key, 20)

    def w(k, shape, scale=0.05):
        return (scale * jax.random.normal(k, shape)).astype(jnp.float32)

    def ln_affine(kg, kb):
        g = (1.0 + 0.1 * jax.random.normal(kg, (1, HIDDEN))).astype(jnp.float32)
        b = (0.05 * jax.random.normal(kb, (1, HIDDEN))).astype(jnp.float32)
        return g, b

    g1, b1 = ln_affine(ks[14], ks[15])
    g2, b2 = ln_affine(ks[16], ks[17])
    g3, b3 = ln_affine(ks[18], ks[19])

    return [
        g1, b1,                                   # norm1
        w(ks[0], (HIDDEN, HIDDEN)),               # self-attn  query   (in, out)
        w(ks[1], (HIDDEN, HIDDEN)),               # self-attn  key
        w(ks[2], (HIDDEN, HIDDEN)),               # self-attn  value
        w(ks[3], (HIDDEN, HIDDEN)),               # self-attn  out_proj weight
        w(ks[4], (1, HIDDEN)),                    # self-attn  out_proj bias
        g2, b2,                                   # norm2
        w(ks[5], (HIDDEN, HIDDEN)),               # cross-attn query
        w(ks[6], (CONTEXT, HIDDEN)),              # cross-attn key
        w(ks[7], (CONTEXT, HIDDEN)),              # cross-attn value
        w(ks[8], (HIDDEN, HIDDEN)),               # cross-attn out_proj weight
        w(ks[9], (1, HIDDEN)),                    # cross-attn out_proj bias
        g3, b3,                                   # norm3
        w(ks[10], (HIDDEN, 4 * HIDDEN)),          # ffn linear1 weight
        w(ks[11], (1, 4 * HIDDEN)),               # ffn linear1 bias
        w(ks[12], (4 * HIDDEN, HIDDEN)),          # ffn linear2 weight
        w(ks[13], (1, HIDDEN)),                   # ffn linear2 bias
    ]


if __name__ == "__main__":
    key = jax.random.PRNGKey(0)
    kx, kc, kp = jax.random.split(key, 3)
    x = jax.random.normal(kx, (BATCH, SEQ, HIDDEN), jnp.float32)
    context = jax.random.normal(kc, (BATCH, SEQ, CONTEXT), jnp.float32)
    params = init_params(kp)

    out = jax.block_until_ready(
        transformer_block(x, context, params, num_heads=HEADS))
    assert out.shape == (BATCH, SEQ, HIDDEN)

    with jax.default_matmul_precision("float32"):
        ref = jax.block_until_ready(
            reference_transformer_block(x, context, params, num_heads=HEADS))

    np.testing.assert_allclose(np.asarray(out), np.asarray(ref),
                               rtol=2e-2, atol=2e-2)
    print("KERNEL_OK")
</pallas_src>

<mosaic_0001>
module attributes {stable_mosaic.version = 11 : i64} {
  func.func @_transformer_block_kernel(%arg0: i32, %arg1: memref<16x32xf32, #tpu.memory_space<vmem>>, %arg2: memref<16x16xf32, #tpu.memory_space<vmem>>, %arg3: memref<128x32xf32, #tpu.memory_space<vmem>>, %arg4: memref<96x32xf32, #tpu.memory_space<vmem>>, %arg5: memref<32x128xf32, #tpu.memory_space<vmem>>, %arg6: memref<128x32xf32, #tpu.memory_space<vmem>>, %arg7: memref<320x32xf32, #tpu.memory_space<vmem>>, %arg8: memref<16x128xf32, #tpu.memory_space<vmem>>, %arg9: memref<16x32xf32, #tpu.memory_space<vmem>>) attributes {dimension_semantics = [#tpu.dimension_semantics<arbitrary>], iteration_bounds = array<i64: 1>, scalar_prefetch = 0 : i64, scratch_operands = 0 : i64, tpu.core_type = #tpu.core_type<tc>, window_params = [{pipeline_mode = #tpu.pipeline_mode<synchronous>, transform_indices = @transform_0, window_bounds = array<i64: 16, 32>}, {pipeline_mode = #tpu.pipeline_mode<synchronous>, transform_indices = @transform_1, window_bounds = array<i64: 16, 16>}, {pipeline_mode = #tpu.pipeline_mode<synchronous>, transform_indices = @transform_2, window_bounds = array<i64: 128, 32>}, {pipeline_mode = #tpu.pipeline_mode<synchronous>, transform_indices = @transform_3, window_bounds = array<i64: 96, 32>}, {pipeline_mode = #tpu.pipeline_mode<synchronous>, transform_indices = @transform_4, window_bounds = array<i64: 32, 128>}, {pipeline_mode = #tpu.pipeline_mode<synchronous>, transform_indices = @transform_5, window_bounds = array<i64: 128, 32>}, {pipeline_mode = #tpu.pipeline_mode<synchronous>, transform_indices = @transform_6, window_bounds = array<i64: 320, 32>}, {pipeline_mode = #tpu.pipeline_mode<synchronous>, transform_indices = @transform_7, window_bounds = array<i64: 16, 128>}, {pipeline_mode = #tpu.pipeline_mode<synchronous>, transform_indices = @transform_8, window_bounds = array<i64: 16, 32>}]} {
    %c0 = arith.constant 0 : index
    %c0_0 = arith.constant 0 : index
    %0 = vector.load %arg1[%c0, %c0_0] : memref<16x32xf32, #tpu.memory_space<vmem>>, vector<16x32xf32>
    %c0_1 = arith.constant 0 : index
    %c0_2 = arith.constant 0 : index
    %1 = vector.load %arg2[%c0_1, %c0_2] : memref<16x16xf32, #tpu.memory_space<vmem>>, vector<16x16xf32>
    %c0_3 = arith.constant 0 : index
    %c0_4 = arith.constant 0 : index
    %2 = vector.load %arg8[%c0_3, %c0_4] : memref<16x128xf32, #tpu.memory_space<vmem>>, vector<1x32xf32>
    %c1 = arith.constant 1 : index
    %c0_5 = arith.constant 0 : index
    %3 = vector.load %arg8[%c1, %c0_5] : memref<16x128xf32, #tpu.memory_space<vmem>>, vector<1x32xf32>
    %c2 = arith.constant 2 : index
    %c0_6 = arith.constant 0 : index
    %4 = vector.load %arg8[%c2, %c0_6] : memref<16x128xf32, #tpu.memory_space<vmem>>, vector<1x32xf32>
    %c3 = arith.constant 3 : index
    %c0_7 = arith.constant 0 : index
    %5 = vector.load %arg8[%c3, %c0_7] : memref<16x128xf32, #tpu.memory_space<vmem>>, vector<1x32xf32>
    %c4 = arith.constant 4 : index
    %c0_8 = arith.constant 0 : index
    %6 = vector.load %arg8[%c4, %c0_8] : memref<16x128xf32, #tpu.memory_space<vmem>>, vector<1x32xf32>
    %c5 = arith.constant 5 : index
    %c0_9 = arith.constant 0 : index
    %7 = vector.load %arg8[%c5, %c0_9] : memref<16x128xf32, #tpu.memory_space<vmem>>, vector<1x32xf32>
    %c6 = arith.constant 6 : index
    %c0_10 = arith.constant 0 : index
    %8 = vector.load %arg8[%c6, %c0_10] : memref<16x128xf32, #tpu.memory_space<vmem>>, vector<1x32xf32>
    %c7 = arith.constant 7 : index
    %c0_11 = arith.constant 0 : index
    %9 = vector.load %arg8[%c7, %c0_11] : memref<16x128xf32, #tpu.memory_space<vmem>>, vector<1x32xf32>
    %c8 = arith.constant 8 : index
    %c0_12 = arith.constant 0 : index
    %10 = vector.load %arg8[%c8, %c0_12] : memref<16x128xf32, #tpu.memory_space<vmem>>, vector<1x32xf32>
    %c9 = arith.constant 9 : index
    %c0_13 = arith.constant 0 : index
    %11 = vector.load %arg8[%c9, %c0_13] : memref<16x128xf32, #tpu.memory_space<vmem>>, vector<1x128xf32>
    %c0_14 = arith.constant 0 : index
    %c0_15 = arith.constant 0 : index
    %12 = vector.load %arg7[%c0_14, %c0_15] : memref<320x32xf32, #tpu.memory_space<vmem>>, vector<32x32xf32>
    %c32 = arith.constant 32 : index
    %c0_16 = arith.constant 0 : index
    %13 = vector.load %arg7[%c32, %c0_16] : memref<320x32xf32, #tpu.memory_space<vmem>>, vector<32x32xf32>
    %c64 = arith.constant 64 : index
    %c0_17 = arith.constant 0 : index
    %14 = vector.load %arg7[%c64, %c0_17] : memref<320x32xf32, #tpu.memory_space<vmem>>, vector<32x32xf32>
    %c96 = arith.constant 96 : index
    %c0_18 = arith.constant 0 : index
    %15 = vector.load %arg7[%c96, %c0_18] : memref<320x32xf32, #tpu.memory_space<vmem>>, vector<32x32xf32>
    %c128 = arith.constant 128 : index
    %c0_19 = arith.constant 0 : index
    %16 = vector.load %arg7[%c128, %c0_19] : memref<320x32xf32, #tpu.memory_space<vmem>>, vector<32x32xf32>
    %c160 = arith.constant 160 : index
    %c0_20 = arith.constant 0 : index
    %17 = vector.load %arg7[%c160, %c0_20] : memref<320x32xf32, #tpu.memory_space<vmem>>, vector<32x32xf32>
    %c192 = arith.constant 192 : index
    %c0_21 = arith.constant 0 : index
    %18 = vector.load %arg7[%c192, %c0_21] : memref<320x32xf32, #tpu.memory_space<vmem>>, vector<32x32xf32>
    %c224 = arith.constant 224 : index
    %c0_22 = arith.constant 0 : index
    %19 = vector.load %arg7[%c224, %c0_22] : memref<320x32xf32, #tpu.memory_space<vmem>>, vector<32x32xf32>
    %c256 = arith.constant 256 : index
    %c0_23 = arith.constant 0 : index
    %20 = vector.load %arg7[%c256, %c0_23] : memref<320x32xf32, #tpu.memory_space<vmem>>, vector<32x32xf32>
    %c288 = arith.constant 288 : index
    %c0_24 = arith.constant 0 : index
    %21 = vector.load %arg7[%c288, %c0_24] : memref<320x32xf32, #tpu.memory_space<vmem>>, vector<32x32xf32>
    %c0_25 = arith.constant 0 : index
    %c0_26 = arith.constant 0 : index
    %22 = vector.load %arg3[%c0_25, %c0_26] : memref<128x32xf32, #tpu.memory_space<vmem>>, vector<32x32xf32>
    %c32_27 = arith.constant 32 : index
    %c0_28 = arith.constant 0 : index
    %23 = vector.load %arg3[%c32_27, %c0_28] : memref<128x32xf32, #tpu.memory_space<vmem>>, vector<32x32xf32>
    %c64_29 = arith.constant 64 : index
    %c0_30 = arith.constant 0 : index
    %24 = vector.load %arg3[%c64_29, %c0_30] : memref<128x32xf32, #tpu.memory_space<vmem>>, vector<32x32xf32>
    %c96_31 = arith.constant 96 : index
    %c0_32 = arith.constant 0 : index
    %25 = vector.load %arg3[%c96_31, %c0_32] : memref<128x32xf32, #tpu.memory_space<vmem>>, vector<32x32xf32>
    %c0_33 = arith.constant 0 : index
    %c0_34 = arith.constant 0 : index
    %26 = vector.load %arg4[%c0_33, %c0_34] : memref<96x32xf32, #tpu.memory_space<vmem>>, vector<32x32xf32>
    %c32_35 = arith.constant 32 : index
    %c0_36 = arith.constant 0 : index
    %27 = vector.load %arg4[%c32_35, %c0_36] : memref<96x32xf32, #tpu.memory_space<vmem>>, vector<16x32xf32>
    %c48 = arith.constant 48 : index
    %c0_37 = arith.constant 0 : index
    %28 = vector.load %arg4[%c48, %c0_37] : memref<96x32xf32, #tpu.memory_space<vmem>>, vector<16x32xf32>
    %c64_38 = arith.constant 64 : index
    %c0_39 = arith.constant 0 : index
    %29 = vector.load %arg4[%c64_38, %c0_39] : memref<96x32xf32, #tpu.memory_space<vmem>>, vector<32x32xf32>
    %cst = arith.constant dense<0.000000e+00> : vector<16xf32>
    %30 = vector.multi_reduction <add>, %0, %cst [1] : vector<16x32xf32> to vector<16xf32>
    %31 = vector.shape_cast %30 : vector<16xf32> to vector<16x1xf32>
    %cst_40 = arith.constant 3.200000e+01 : f32
    %32 = vector.broadcast %cst_40 : f32 to vector<16x1xf32>
    %33 = arith.divf %31, %32 : vector<16x1xf32>
    %34 = vector.broadcast %33 : vector<16x1xf32> to vector<16x32xf32>
    %35 = arith.subf %0, %34 : vector<16x32xf32>
    %36 = arith.mulf %35, %35 : vector<16x32xf32>
    %cst_41 = arith.constant dense<0.000000e+00> : vector<16xf32>
    %37 = vector.multi_reduction <add>, %36, %cst_41 [1] : vector<16x32xf32> to vector<16xf32>
    %38 = vector.shape_cast %37 : vector<16xf32> to vector<16x1xf32>
    %cst_42 = arith.constant 3.200000e+01 : f32
    %39 = vector.broadcast %cst_42 : f32 to vector<16x1xf32>
    %40 = arith.divf %38, %39 : vector<16x1xf32>
    %41 = vector.broadcast %33 : vector<16x1xf32> to vector<16x32xf32>
    %42 = arith.subf %0, %41 : vector<16x32xf32>
    %cst_43 = arith.constant 9.99999974E-6 : f32
    %43 = vector.broadcast %cst_43 : f32 to vector<16x1xf32>
    %44 = arith.addf %40, %43 : vector<16x1xf32>
    %45 = math.rsqrt %44 : vector<16x1xf32>
    %46 = vector.broadcast %45 : vector<16x1xf32> to vector<16x32xf32>
    %47 = arith.mulf %42, %46 : vector<16x32xf32>
    %48 = vector.broadcast %2 : vector<1x32xf32> to vector<16x32xf32>
    %49 = arith.mulf %47, %48 : vector<16x32xf32>
    %50 = vector.broadcast %3 : vector<1x32xf32> to vector<16x32xf32>
    %51 = arith.addf %49, %50 : vector<16x32xf32>
    %cst_44 = arith.constant dense<0.000000e+00> : vector<16x32xf32>
    %52 = tpu.matmul %51, %22, %cst_44 {dimension_numbers = #tpu.dot_dimension_numbers<[1], [0], [0], [1], [0, 0, 1, 1], [], []>} : vector<16x32xf32>, vector<32x32xf32>, vector<16x32xf32> -> vector<16x32xf32>
    %cst_45 = arith.constant dense<0.000000e+00> : vector<16x32xf32>
    %53 = tpu.matmul %51, %23, %cst_45 {dimension_numbers = #tpu.dot_dimension_numbers<[1], [0], [0], [1], [0, 0, 1, 1], [], []>} : vector<16x32xf32>, vector<32x32xf32>, vector<16x32xf32> -> vector<16x32xf32>
    %cst_46 = arith.constant dense<0.000000e+00> : vector<16x32xf32>
    %54 = tpu.matmul %51, %24, %cst_46 {dimension_numbers = #tpu.dot_dimension_numbers<[1], [0], [0], [1], [0, 0, 1, 1], [], []>} : vector<16x32xf32>, vector<32x32xf32>, vector<16x32xf32> -> vector<16x32xf32>
    %cst_47 = arith.constant dense<0.000000e+00> : vector<16x32xf32>
    %55 = tpu.matmul %53, %14, %cst_47 {dimension_numbers = #tpu.dot_dimension_numbers<[1], [0], [0], [1], [0, 0, 1, 1], [], []>} : vector<16x32xf32>, vector<32x32xf32>, vector<16x32xf32> -> vector<16x32xf32>
    %56 = arith.mulf %52, %55 : vector<16x32xf32>
    %cst_48 = arith.constant dense<0.000000e+00> : vector<16x32xf32>
    %57 = tpu.matmul %56, %12, %cst_48 {dimension_numbers = #tpu.dot_dimension_numbers<[1], [0], [0], [1], [0, 0, 1, 1], [], []>} : vector<16x32xf32>, vector<32x32xf32>, vector<16x32xf32> -> vector<16x32xf32>
    %cst_49 = arith.constant 5.000000e-01 : f32
    %58 = vector.broadcast %cst_49 : f32 to vector<16x32xf32>
    %59 = arith.mulf %57, %58 : vector<16x32xf32>
    %cst_50 = arith.constant dense<0.000000e+00> : vector<16x32xf32>
    %60 = tpu.matmul %53, %15, %cst_50 {dimension_numbers = #tpu.dot_dimension_numbers<[1], [0], [0], [1], [0, 0, 1, 1], [], []>} : vector<16x32xf32>, vector<32x32xf32>, vector<16x32xf32> -> vector<16x32xf32>
    %61 = arith.mulf %52, %60 : vector<16x32xf32>
    %cst_51 = arith.constant dense<0.000000e+00> : vector<16x32xf32>
    %62 = tpu.matmul %61, %12, %cst_51 {dimension_numbers = #tpu.dot_dimension_numbers<[1], [0], [0], [1], [0, 0, 1, 1], [], []>} : vector<16x32xf32>, vector<32x32xf32>, vector<16x32xf32> -> vector<16x32xf32>
    %cst_52 = arith.constant 5.000000e-01 : f32
    %63 = vector.broadcast %cst_52 : f32 to vector<16x32xf32>
    %64 = arith.mulf %62, %63 : vector<16x32xf32>
    %cst_53 = arith.constant dense<0.000000e+00> : vector<16x32xf32>
    %65 = tpu.matmul %53, %16, %cst_53 {dimension_numbers = #tpu.dot_dimension_numbers<[1], [0], [0], [1], [0, 0, 1, 1], [], []>} : vector<16x32xf32>, vector<32x32xf32>, vector<16x32xf32> -> vector<16x32xf32>
    %66 = arith.mulf %52, %65 : vector<16x32xf32>
    %cst_54 = arith.constant dense<0.000000e+00> : vector<16x32xf32>
    %67 = tpu.matmul %66, %12, %cst_54 {dimension_numbers = #tpu.dot_dimension_numbers<[1], [0], [0], [1], [0, 0, 1, 1], [], []>} : vector<16x32xf32>, vector<32x32xf32>, vector<16x32xf32> -> vector<16x32xf32>
    %cst_55 = arith.constant 5.000000e-01 : f32
    %68 = vector.broadcast %cst_55 : f32 to vector<16x32xf32>
    %69 = arith.mulf %67, %68 : vector<16x32xf32>
    %cst_56 = arith.constant dense<0.000000e+00> : vector<16x32xf32>
    %70 = tpu.matmul %53, %17, %cst_56 {dimension_numbers = #tpu.dot_dimension_numbers<[1], [0], [0], [1], [0, 0, 1, 1], [], []>} : vector<16x32xf32>, vector<32x32xf32>, vector<16x32xf32> -> vector<16x32xf32>
    %71 = arith.mulf %52, %70 : vector<16x32xf32>
    %cst_57 = arith.constant dense<0.000000e+00> : vector<16x32xf32>
    %72 = tpu.matmul %71, %12, %cst_57 {dimension_numbers = #tpu.dot_dimension_numbers<[1], [0], [0], [1], [0, 0, 1, 1], [], []>} : vector<16x32xf32>, vector<32x32xf32>, vector<16x32xf32> -> vector<16x32xf32>
    %cst_58 = arith.constant 5.000000e-01 : f32
    %73 = vector.broadcast %cst_58 : f32 to vector<16x32xf32>
    %74 = arith.mulf %72, %73 : vector<16x32xf32>
    %cst_59 = arith.constant dense<0.000000e+00> : vector<16x32xf32>
    %75 = tpu.matmul %53, %18, %cst_59 {dimension_numbers = #tpu.dot_dimension_numbers<[1], [0], [0], [1], [0, 0, 1, 1], [], []>} : vector<16x32xf32>, vector<32x32xf32>, vector<16x32xf32> -> vector<16x32xf32>
    %76 = arith.mulf %52, %75 : vector<16x32xf32>
    %cst_60 = arith.constant dense<0.000000e+00> : vector<16x32xf32>
    %77 = tpu.matmul %76, %12, %cst_60 {dimension_numbers = #tpu.dot_dimension_numbers<[1], [0], [0], [1], [0, 0, 1, 1], [], []>} : vector<16x32xf32>, vector<32x32xf32>, vector<16x32xf32> -> vector<16x32xf32>
    %cst_61 = arith.constant 5.000000e-01 : f32
    %78 = vector.broadcast %cst_61 : f32 to vector<16x32xf32>
    %79 = arith.mulf %77, %78 : vector<16x32xf32>
    %cst_62 = arith.constant dense<0.000000e+00> : vector<16x32xf32>
    %80 = tpu.matmul %53, %19, %cst_62 {dimension_numbers = #tpu.dot_dimension_numbers<[1], [0], [0], [1], [0, 0, 1, 1], [], []>} : vector<16x32xf32>, vector<32x32xf32>, vector<16x32xf32> -> vector<16x32xf32>
    %81 = arith.mulf %52, %80 : vector<16x32xf32>
    %cst_63 = arith.constant dense<0.000000e+00> : vector<16x32xf32>
    %82 = tpu.matmul %81, %12, %cst_63 {dimension_numbers = #tpu.dot_dimension_numbers<[1], [0], [0], [1], [0, 0, 1, 1], [], []>} : vector<16x32xf32>, vector<32x32xf32>, vector<16x32xf32> -> vector<16x32xf32>
    %cst_64 = arith.constant 5.000000e-01 : f32
    %83 = vector.broadcast %cst_64 : f32 to vector<16x32xf32>
    %84 = arith.mulf %82, %83 : vector<16x32xf32>
    %cst_65 = arith.constant dense<0.000000e+00> : vector<16x32xf32>
    %85 = tpu.matmul %53, %20, %cst_65 {dimension_numbers = #tpu.dot_dimension_numbers<[1], [0], [0], [1], [0, 0, 1, 1], [], []>} : vector<16x32xf32>, vector<32x32xf32>, vector<16x32xf32> -> vector<16x32xf32>
    %86 = arith.mulf %52, %85 : vector<16x32xf32>
    %cst_66 = arith.constant dense<0.000000e+00> : vector<16x32xf32>
    %87 = tpu.matmul %86, %12, %cst_66 {dimension_numbers = #tpu.dot_dimension_numbers<[1], [0], [0], [1], [0, 0, 1, 1], [], []>} : vector<16x32xf32>, vector<32x32xf32>, vector<16x32xf32> -> vector<16x32xf32>
    %cst_67 = arith.constant 5.000000e-01 : f32
    %88 = vector.broadcast %cst_67 : f32 to vector<16x32xf32>
    %89 = arith.mulf %87, %88 : vector<16x32xf32>
    %cst_68 = arith.constant dense<0.000000e+00> : vector<16x32xf32>
    %90 = tpu.matmul %53, %21, %cst_68 {dimension_numbers = #tpu.dot_dimension_numbers<[1], [0], [0], [1], [0, 0, 1, 1], [], []>} : vector<16x32xf32>, vector<32x32xf32>, vector<16x32xf32> -> vector<16x32xf32>
    %91 = arith.mulf %52, %90 : vector<16x32xf32>
    %cst_69 = arith.constant dense<0.000000e+00> : vector<16x32xf32>
    %92 = tpu.matmul %91, %12, %cst_69 {dimension_numbers = #tpu.dot_dimension_numbers<[1], [0], [0], [1], [0, 0, 1, 1], [], []>} : vector<16x32xf32>, vector<32x32xf32>, vector<16x32xf32> -> vector<16x32xf32>
    %cst_70 = arith.constant 5.000000e-01 : f32
    %93 = vector.broadcast %cst_70 : f32 to vector<16x32xf32>
    %94 = arith.mulf %92, %93 : vector<16x32xf32>
    %95 = arith.maximumf %59, %64 : vector<16x32xf32>
    %96 = arith.maximumf %95, %69 : vector<16x32xf32>
    %97 = arith.maximumf %96, %74 : vector<16x32xf32>
    %98 = arith.maximumf %97, %79 : vector<16x32xf32>
    %99 = arith.maximumf %98, %84 : vector<16x32xf32>
    %100 = arith.maximumf %99, %89 : vector<16x32xf32>
    %101 = arith.maximumf %100, %94 : vector<16x32xf32>
    %102 = arith.subf %59, %101 : vector<16x32xf32>
    %103 = math.exp %102 : vector<16x32xf32>
    %104 = arith.subf %64, %101 : vector<16x32xf32>
    %105 = math.exp %104 : vector<16x32xf32>
    %106 = arith.subf %69, %101 : vector<16x32xf32>
    %107 = math.exp %106 : vector<16x32xf32>
    %108 = arith.subf %74, %101 : vector<16x32xf32>
    %109 = math.exp %108 : vector<16x32xf32>
    %110 = arith.subf %79, %101 : vector<16x32xf32>
    %111 = math.exp %110 : vector<16x32xf32>
    %112 = arith.subf %84, %101 : vector<16x32xf32>
    %113 = math.exp %112 : vector<16x32xf32>
    %114 = arith.subf %89, %101 : vector<16x32xf32>
    %115 = math.exp %114 : vector<16x32xf32>
    %116 = arith.subf %94, %101 : vector<16x32xf32>
    %117 = math.exp %116 : vector<16x32xf32>
    %118 = arith.addf %103, %105 : vector<16x32xf32>
    %119 = arith.addf %118, %107 : vector<16x32xf32>
    %120 = arith.addf %119, %109 : vector<16x32xf32>
    %121 = arith.addf %120, %111 : vector<16x32xf32>
    %122 = arith.addf %121, %113 : vector<16x32xf32>
    %123 = arith.addf %122, %115 : vector<16x32xf32>
    %124 = arith.addf %123, %117 : vector<16x32xf32>
    %125 = tpu.reciprocal %124 : vector<16x32xf32> -> vector<16x32xf32>
    %126 = arith.mulf %103, %125 : vector<16x32xf32>
    %127 = arith.mulf %105, %125 : vector<16x32xf32>
    %128 = arith.addf %126, %127 : vector<16x32xf32>
    %129 = arith.mulf %107, %125 : vector<16x32xf32>
    %130 = arith.addf %128, %129 : vector<16x32xf32>
    %131 = arith.mulf %109, %125 : vector<16x32xf32>
    %132 = arith.addf %130, %131 : vector<16x32xf32>
    %133 = arith.mulf %111, %125 : vector<16x32xf32>
    %134 = arith.addf %132, %133 : vector<16x32xf32>
    %135 = arith.mulf %113, %125 : vector<16x32xf32>
    %136 = arith.addf %134, %135 : vector<16x32xf32>
    %137 = arith.mulf %115, %125 : vector<16x32xf32>
    %138 = arith.addf %136, %137 : vector<16x32xf32>
    %139 = arith.mulf %117, %125 : vector<16x32xf32>
    %140 = arith.addf %138, %139 : vector<16x32xf32>
    %cst_71 = arith.constant dense<0.000000e+00> : vector<16x32xf32>
    %141 = tpu.matmul %54, %13, %cst_71 {dimension_numbers = #tpu.dot_dimension_numbers<[1], [0], [0], [1], [0, 0, 1, 1], [], []>} : vector<16x32xf32>, vector<32x32xf32>, vector<16x32xf32> -> vector<16x32xf32>
    %142 = arith.mulf %140, %141 : vector<16x32xf32>
    %cst_72 = arith.constant dense<0.000000e+00> : vector<16x32xf32>
    %143 = tpu.matmul %142, %25, %cst_72 {dimension_numbers = #tpu.dot_dimension_numbers<[1], [0], [0], [1], [0, 0, 1, 1], [], []>} : vector<16x32xf32>, vector<32x32xf32>, vector<16x32xf32> -> vector<16x32xf32>
    %144 = vector.broadcast %8 : vector<1x32xf32> to vector<16x32xf32>
    %145 = arith.addf %143, %144 : vector<16x32xf32>
    %146 = arith.addf %145, %0 : vector<16x32xf32>
    %cst_73 = arith.constant dense<0.000000e+00> : vector<16xf32>
    %147 = vector.multi_reduction <add>, %146, %cst_73 [1] : vector<16x32xf32> to vector<16xf32>
    %148 = vector.shape_cast %147 : vector<16xf32> to vector<16x1xf32>
    %cst_74 = arith.constant 3.200000e+01 : f32
    %149 = vector.broadcast %cst_74 : f32 to vector<16x1xf32>
    %150 = arith.divf %148, %149 : vector<16x1xf32>
    %151 = vector.broadcast %150 : vector<16x1xf32> to vector<16x32xf32>
    %152 = arith.subf %146, %151 : vector<16x32xf32>
    %153 = arith.mulf %152, %152 : vector<16x32xf32>
    %cst_75 = arith.constant dense<0.000000e+00> : vector<16xf32>
    %154 = vector.multi_reduction <add>, %153, %cst_75 [1] : vector<16x32xf32> to vector<16xf32>
    %155 = vector.shape_cast %154 : vector<16xf32> to vector<16x1xf32>
    %cst_76 = arith.constant 3.200000e+01 : f32
    %156 = vector.broadcast %cst_76 : f32 to vector<16x1xf32>
    %157 = arith.divf %155, %156 : vector<16x1xf32>
    %158 = vector.broadcast %150 : vector<16x1xf32> to vector<16x32xf32>
    %159 = arith.subf %146, %158 : vector<16x32xf32>
    %cst_77 = arith.constant 9.99999974E-6 : f32
    %160 = vector.broadcast %cst_77 : f32 to vector<16x1xf32>
    %161 = arith.addf %157, %160 : vector<16x1xf32>
    %162 = math.rsqrt %161 : vector<16x1xf32>
    %163 = vector.broadcast %162 : vector<16x1xf32> to vector<16x32xf32>
    %164 = arith.mulf %159, %163 : vector<16x32xf32>
    %165 = vector.broadcast %4 : vector<1x32xf32> to vector<16x32xf32>
    %166 = arith.mulf %164, %165 : vector<16x32xf32>
    %167 = vector.broadcast %5 : vector<1x32xf32> to vector<16x32xf32>
    %168 = arith.addf %166, %167 : vector<16x32xf32>
    %cst_78 = arith.constant dense<0.000000e+00> : vector<16x32xf32>
    %169 = tpu.matmul %168, %26, %cst_78 {dimension_numbers = #tpu.dot_dimension_numbers<[1], [0], [0], [1], [0, 0, 1, 1], [], []>} : vector<16x32xf32>, vector<32x32xf32>, vector<16x32xf32> -> vector<16x32xf32>
    %cst_79 = arith.constant dense<0.000000e+00> : vector<16x32xf32>
    %170 = tpu.matmul %1, %27, %cst_79 {dimension_numbers = #tpu.dot_dimension_numbers<[1], [0], [0], [1], [0, 0, 1, 1], [], []>} : vector<16x16xf32>, vector<16x32xf32>, vector<16x32xf32> -> vector<16x32xf32>
    %cst_80 = arith.constant dense<0.000000e+00> : vector<16x32xf32>
    %171 = tpu.matmul %1, %28, %cst_80 {dimension_numbers = #tpu.dot_dimension_numbers<[1], [0], [0], [1], [0, 0, 1, 1], [], []>} : vector<16x16xf32>, vector<16x32xf32>, vector<16x32xf32> -> vector<16x32xf32>
    %cst_81 = arith.constant dense<0.000000e+00> : vector<16x32xf32>
    %172 = tpu.matmul %170, %14, %cst_81 {dimension_numbers = #tpu.dot_dimension_numbers<[1], [0], [0], [1], [0, 0, 1, 1], [], []>} : vector<16x32xf32>, vector<32x32xf32>, vector<16x32xf32> -> vector<16x32xf32>
    %173 = arith.mulf %169, %172 : vector<16x32xf32>
    %cst_82 = arith.constant dense<0.000000e+00> : vector<16x32xf32>
    %174 = tpu.matmul %173, %12, %cst_82 {dimension_numbers = #tpu.dot_dimension_numbers<[1], [0], [0], [1], [0, 0, 1, 1], [], []>} : vector<16x32xf32>, vector<32x32xf32>, vector<16x32xf32> -> vector<16x32xf32>
    %cst_83 = arith.constant 5.000000e-01 : f32
    %175 = vector.broadcast %cst_83 : f32 to vector<16x32xf32>
    %176 = arith.mulf %174, %175 : vector<16x32xf32>
    %cst_84 = arith.constant dense<0.000000e+00> : vector<16x32xf32>
    %177 = tpu.matmul %170, %15, %cst_84 {dimension_numbers = #tpu.dot_dimension_numbers<[1], [0], [0], [1], [0, 0, 1, 1], [], []>} : vector<16x32xf32>, vector<32x32xf32>, vector<16x32xf32> -> vector<16x32xf32>
    %178 = arith.mulf %169, %177 : vector<16x32xf32>
    %cst_85 = arith.constant dense<0.000000e+00> : vector<16x32xf32>
    %179 = tpu.matmul %178, %12, %cst_85 {dimension_numbers = #tpu.dot_dimension_numbers<[1], [0], [0], [1], [0, 0, 1, 1], [], []>} : vector<16x32xf32>, vector<32x32xf32>, vector<16x32xf32> -> vector<16x32xf32>
    %cst_86 = arith.constant 5.000000e-01 : f32
    %180 = vector.broadcast %cst_86 : f32 to vector<16x32xf32>
    %181 = arith.mulf %179, %180 : vector<16x32xf32>
    %cst_87 = arith.constant dense<0.000000e+00> : vector<16x32xf32>
    %182 = tpu.matmul %170, %16, %cst_87 {dimension_numbers = #tpu.dot_dimension_numbers<[1], [0], [0], [1], [0, 0, 1, 1], [], []>} : vector<16x32xf32>, vector<32x32xf32>, vector<16x32xf32> -> vector<16x32xf32>
    %183 = arith.mulf %169, %182 : vector<16x32xf32>
    %cst_88 = arith.constant dense<0.000000e+00> : vector<16x32xf32>
    %184 = tpu.matmul %183, %12, %cst_88 {dimension_numbers = #tpu.dot_dimension_numbers<[1], [0], [0], [1], [0, 0, 1, 1], [], []>} : vector<16x32xf32>, vector<32x32xf32>, vector<16x32xf32> -> vector<16x32xf32>
    %cst_89 = arith.constant 5.000000e-01 : f32
    %185 = vector.broadcast %cst_89 : f32 to vector<16x32xf32>
    %186 = arith.mulf %184, %185 : vector<16x32xf32>
    %cst_90 = arith.constant dense<0.000000e+00> : vector<16x32xf32>
    %187 = tpu.matmul %170, %17, %cst_90 {dimension_numbers = #tpu.dot_dimension_numbers<[1], [0], [0], [1], [0, 0, 1, 1], [], []>} : vector<16x32xf32>, vector<32x32xf32>, vector<16x32xf32> -> vector<16x32xf32>
    %188 = arith.mulf %169, %187 : vector<16x32xf32>
    %cst_91 = arith.constant dense<0.000000e+00> : vector<16x32xf32>
    %189 = tpu.matmul %188, %12, %cst_91 {dimension_numbers = #tpu.dot_dimension_numbers<[1], [0], [0], [1], [0, 0, 1, 1], [], []>} : vector<16x32xf32>, vector<32x32xf32>, vector<16x32xf32> -> vector<16x32xf32>
    %cst_92 = arith.constant 5.000000e-01 : f32
    %190 = vector.broadcast %cst_92 : f32 to vector<16x32xf32>
    %191 = arith.mulf %189, %190 : vector<16x32xf32>
    %cst_93 = arith.constant dense<0.000000e+00> : vector<16x32xf32>
    %192 = tpu.matmul %170, %18, %cst_93 {dimension_numbers = #tpu.dot_dimension_numbers<[1], [0], [0], [1], [0, 0, 1, 1], [], []>} : vector<16x32xf32>, vector<32x32xf32>, vector<16x32xf32> -> vector<16x32xf32>
    %193 = arith.mulf %169, %192 : vector<16x32xf32>
    %cst_94 = arith.constant dense<0.000000e+00> : vector<16x32xf32>
    %194 = tpu.matmul %193, %12, %cst_94 {dimension_numbers = #tpu.dot_dimension_numbers<[1], [0], [0], [1], [0, 0, 1, 1], [], []>} : vector<16x32xf32>, vector<32x32xf32>, vector<16x32xf32> -> vector<16x32xf32>
    %cst_95 = arith.constant 5.000000e-01 : f32
    %195 = vector.broadcast %cst_95 : f32 to vector<16x32xf32>
    %196 = arith.mulf %194, %195 : vector<16x32xf32>
    %cst_96 = arith.constant dense<0.000000e+00> : vector<16x32xf32>
    %197 = tpu.matmul %170, %19, %cst_96 {dimension_numbers = #tpu.dot_dimension_numbers<[1], [0], [0], [1], [0, 0, 1, 1], [], []>} : vector<16x32xf32>, vector<32x32xf32>, vector<16x32xf32> -> vector<16x32xf32>
    %198 = arith.mulf %169, %197 : vector<16x32xf32>
    %cst_97 = arith.constant dense<0.000000e+00> : vector<16x32xf32>
    %199 = tpu.matmul %198, %12, %cst_97 {dimension_numbers = #tpu.dot_dimension_numbers<[1], [0], [0], [1], [0, 0, 1, 1], [], []>} : vector<16x32xf32>, vector<32x32xf32>, vector<16x32xf32> -> vector<16x32xf32>
    %cst_98 = arith.constant 5.000000e-01 : f32
    %200 = vector.broadcast %cst_98 : f32 to vector<16x32xf32>
    %201 = arith.mulf %199, %200 : vector<16x32xf32>
    %cst_99 = arith.constant dense<0.000000e+00> : vector<16x32xf32>
    %202 = tpu.matmul %170, %20, %cst_99 {dimension_numbers = #tpu.dot_dimension_numbers<[1], [0], [0], [1], [0, 0, 1, 1], [], []>} : vector<16x32xf32>, vector<32x32xf32>, vector<16x32xf32> -> vector<16x32xf32>
    %203 = arith.mulf %169, %202 : vector<16x32xf32>
    %cst_100 = arith.constant dense<0.000000e+00> : vector<16x32xf32>
    %204 = tpu.matmul %203, %12, %cst_100 {dimension_numbers = #tpu.dot_dimension_numbers<[1], [0], [0], [1], [0, 0, 1, 1], [], []>} : vector<16x32xf32>, vector<32x32xf32>, vector<16x32xf32> -> vector<16x32xf32>
    %cst_101 = arith.constant 5.000000e-01 : f32
    %205 = vector.broadcast %cst_101 : f32 to vector<16x32xf32>
    %206 = arith.mulf %204, %205 : vector<16x32xf32>
    %cst_102 = arith.constant dense<0.000000e+00> : vector<16x32xf32>
    %207 = tpu.matmul %170, %21, %cst_102 {dimension_numbers = #tpu.dot_dimension_numbers<[1], [0], [0], [1], [0, 0, 1, 1], [], []>} : vector<16x32xf32>, vector<32x32xf32>, vector<16x32xf32> -> vector<16x32xf32>
    %208 = arith.mulf %169, %207 : vector<16x32xf32>
    %cst_103 = arith.constant dense<0.000000e+00> : vector<16x32xf32>
    %209 = tpu.matmul %208, %12, %cst_103 {dimension_numbers = #tpu.dot_dimension_numbers<[1], [0], [0], [1], [0, 0, 1, 1], [], []>} : vector<16x32xf32>, vector<32x32xf32>, vector<16x32xf32> -> vector<16x32xf32>
    %cst_104 = arith.constant 5.000000e-01 : f32
    %210 = vector.broadcast %cst_104 : f32 to vector<16x32xf32>
    %211 = arith.mulf %209, %210 : vector<16x32xf32>
    %212 = arith.maximumf %176, %181 : vector<16x32xf32>
    %213 = arith.maximumf %212, %186 : vector<16x32xf32>
    %214 = arith.maximumf %213, %191 : vector<16x32xf32>
    %215 = arith.maximumf %214, %196 : vector<16x32xf32>
    %216 = arith.maximumf %215, %201 : vector<16x32xf32>
    %217 = arith.maximumf %216, %206 : vector<16x32xf32>
    %218 = arith.maximumf %217, %211 : vector<16x32xf32>
    %219 = arith.subf %176, %218 : vector<16x32xf32>
    %220 = math.exp %219 : vector<16x32xf32>
    %221 = arith.subf %181, %218 : vector<16x32xf32>
    %222 = math.exp %221 : vector<16x32xf32>
    %223 = arith.subf %186, %218 : vector<16x32xf32>
    %224 = math.exp %223 : vector<16x32xf32>
    %225 = arith.subf %191, %218 : vector<16x32xf32>
    %226 = math.exp %225 : vector<16x32xf32>
    %227 = arith.subf %196, %218 : vector<16x32xf32>
    %228 = math.exp %227 : vector<16x32xf32>
    %229 = arith.subf %201, %218 : vector<16x32xf32>
    %230 = math.exp %229 : vector<16x32xf32>
    %231 = arith.subf %206, %218 : vector<16x32xf32>
    %232 = math.exp %231 : vector<16x32xf32>
    %233 = arith.subf %211, %218 : vector<16x32xf32>
    %234 = math.exp %233 : vector<16x32xf32>
    %235 = arith.addf %220, %222 : vector<16x32xf32>
    %236 = arith.addf %235, %224 : vector<16x32xf32>
    %237 = arith.addf %236, %226 : vector<16x32xf32>
    %238 = arith.addf %237, %228 : vector<16x32xf32>
    %239 = arith.addf %238, %230 : vector<16x32xf32>
    %240 = arith.addf %239, %232 : vector<16x32xf32>
    %241 = arith.addf %240, %234 : vector<16x32xf32>
    %242 = tpu.reciprocal %241 : vector<16x32xf32> -> vector<16x32xf32>
    %243 = arith.mulf %220, %242 : vector<16x32xf32>
    %244 = arith.mulf %222, %242 : vector<16x32xf32>
    %245 = arith.addf %243, %244 : vector<16x32xf32>
    %246 = arith.mulf %224, %242 : vector<16x32xf32>
    %247 = arith.addf %245, %246 : vector<16x32xf32>
    %248 = arith.mulf %226, %242 : vector<16x32xf32>
    %249 = arith.addf %247, %248 : vector<16x32xf32>
    %250 = arith.mulf %228, %242 : vector<16x32xf32>
    %251 = arith.addf %249, %250 : vector<16x32xf32>
    %252 = arith.mulf %230, %242 : vector<16x32xf32>
    %253 = arith.addf %251, %252 : vector<16x32xf32>
    %254 = arith.mulf %232, %242 : vector<16x32xf32>
    %255 = arith.addf %253, %254 : vector<16x32xf32>
    %256 = arith.mulf %234, %242 : vector<16x32xf32>
    %257 = arith.addf %255, %256 : vector<16x32xf32>
    %cst_105 = arith.constant dense<0.000000e+00> : vector<16x32xf32>
    %258 = tpu.matmul %171, %13, %cst_105 {dimension_numbers = #tpu.dot_dimension_numbers<[1], [0], [0], [1], [0, 0, 1, 1], [], []>} : vector<16x32xf32>, vector<32x32xf32>, vector<16x32xf32> -> vector<16x32xf32>
    %259 = arith.mulf %257, %258 : vector<16x32xf32>
    %cst_106 = arith.constant dense<0.000000e+00> : vector<16x32xf32>
    %260 = tpu.matmul %259, %29, %cst_106 {dimension_numbers = #tpu.dot_dimension_numbers<[1], [0], [0], [1], [0, 0, 1, 1], [], []>} : vector<16x32xf32>, vector<32x32xf32>, vector<16x32xf32> -> vector<16x32xf32>
    %261 = vector.broadcast %9 : vector<1x32xf32> to vector<16x32xf32>
    %262 = arith.addf %260, %261 : vector<16x32xf32>
    %263 = arith.addf %262, %146 : vector<16x32xf32>
    %cst_107 = arith.constant dense<0.000000e+00> : vector<16xf32>
    %264 = vector.multi_reduction <add>, %263, %cst_107 [1] : vector<16x32xf32> to vector<16xf32>
    %265 = vector.shape_cast %264 : vector<16xf32> to vector<16x1xf32>
    %cst_108 = arith.constant 3.200000e+01 : f32
    %266 = vector.broadcast %cst_108 : f32 to vector<16x1xf32>
    %267 = arith.divf %265, %266 : vector<16x1xf32>
    %268 = vector.broadcast %267 : vector<16x1xf32> to vector<16x32xf32>
    %269 = arith.subf %263, %268 : vector<16x32xf32>
    %270 = arith.mulf %269, %269 : vector<16x32xf32>
    %cst_109 = arith.constant dense<0.000000e+00> : vector<16xf32>
    %271 = vector.multi_reduction <add>, %270, %cst_109 [1] : vector<16x32xf32> to vector<16xf32>
    %272 = vector.shape_cast %271 : vector<16xf32> to vector<16x1xf32>
    %cst_110 = arith.constant 3.200000e+01 : f32
    %273 = vector.broadcast %cst_110 : f32 to vector<16x1xf32>
    %274 = arith.divf %272, %273 : vector<16x1xf32>
    %275 = vector.broadcast %267 : vector<16x1xf32> to vector<16x32xf32>
    %276 = arith.subf %263, %275 : vector<16x32xf32>
    %cst_111 = arith.constant 9.99999974E-6 : f32
    %277 = vector.broadcast %cst_111 : f32 to vector<16x1xf32>
    %278 = arith.addf %274, %277 : vector<16x1xf32>
    %279 = math.rsqrt %278 : vector<16x1xf32>
    %280 = vector.broadcast %279 : vector<16x1xf32> to vector<16x32xf32>
    %281 = arith.mulf %276, %280 : vector<16x32xf32>
    %282 = vector.broadcast %6 : vector<1x32xf32> to vector<16x32xf32>
    %283 = arith.mulf %281, %282 : vector<16x32xf32>
    %284 = vector.broadcast %7 : vector<1x32xf32> to vector<16x32xf32>
    %285 = arith.addf %283, %284 : vector<16x32xf32>
    %c0_112 = arith.constant 0 : index
    %c0_113 = arith.constant 0 : index
    %286 = vector.load %arg5[%c0_112, %c0_113] : memref<32x128xf32, #tpu.memory_space<vmem>>, vector<32x128xf32>
    %cst_114 = arith.constant dense<0.000000e+00> : vector<16x128xf32>
    %287 = tpu.matmul %285, %286, %cst_114 {dimension_numbers = #tpu.dot_dimension_numbers<[1], [0], [0], [1], [0, 0, 1, 1], [], []>} : vector<16x32xf32>, vector<32x128xf32>, vector<16x128xf32> -> vector<16x128xf32>
    %288 = vector.broadcast %11 : vector<1x128xf32> to vector<16x128xf32>
    %289 = arith.addf %287, %288 : vector<16x128xf32>
    %cst_115 = arith.constant 5.000000e-01 : f32
    %290 = vector.broadcast %cst_115 : f32 to vector<16x128xf32>
    %291 = arith.mulf %290, %289 : vector<16x128xf32>
    %cst_116 = arith.constant 0.707106769 : f32
    %292 = vector.broadcast %cst_116 : f32 to vector<16x128xf32>
    %293 = arith.mulf %289, %292 : vector<16x128xf32>
    %294 = math.absf %293 : vector<16x128xf32>
    %cst_117 = arith.constant 0.327591091 : f32
    %295 = vector.broadcast %cst_117 : f32 to vector<16x128xf32>
    %296 = arith.mulf %295, %294 : vector<16x128xf32>
    %cst_118 = arith.constant 1.000000e+00 : f32
    %297 = vector.broadcast %cst_118 : f32 to vector<16x128xf32>
    %298 = arith.addf %297, %296 : vector<16x128xf32>
    %cst_119 = arith.constant 1.000000e+00 : f32
    %299 = vector.broadcast %cst_119 : f32 to vector<16x128xf32>
    %300 = arith.divf %299, %298 : vector<16x128xf32>
    %cst_120 = arith.constant 1.06140542 : f32
    %301 = vector.broadcast %cst_120 : f32 to vector<16x128xf32>
    %302 = arith.mulf %301, %300 : vector<16x128xf32>
    %cst_121 = arith.constant -1.45315206 : f32
    %303 = vector.broadcast %cst_121 : f32 to vector<16x128xf32>
    %304 = arith.addf %302, %303 : vector<16x128xf32>
    %305 = arith.mulf %304, %300 : vector<16x128xf32>
    %cst_122 = arith.constant 1.42141378 : f32
    %306 = vector.broadcast %cst_122 : f32 to vector<16x128xf32>
    %307 = arith.addf %305, %306 : vector<16x128xf32>
    %308 = arith.mulf %307, %300 : vector<16x128xf32>
    %cst_123 = arith.constant -0.284496725 : f32
    %309 = vector.broadcast %cst_123 : f32 to vector<16x128xf32>
    %310 = arith.addf %308, %309 : vector<16x128xf32>
    %311 = arith.mulf %310, %300 : vector<16x128xf32>
    %cst_124 = arith.constant 0.254829586 : f32
    %312 = vector.broadcast %cst_124 : f32 to vector<16x128xf32>
    %313 = arith.addf %311, %312 : vector<16x128xf32>
    %314 = arith.mulf %313, %300 : vector<16x128xf32>
    %cst_125 = arith.constant 0.000000e+00 : f32
    %315 = vector.broadcast %cst_125 : f32 to vector<16x128xf32>
    %316 = arith.subf %315, %294 : vector<16x128xf32>
    %317 = arith.mulf %316, %294 : vector<16x128xf32>
    %318 = math.exp %317 : vector<16x128xf32>
    %319 = arith.mulf %314, %318 : vector<16x128xf32>
    %cst_126 = arith.constant 1.000000e+00 : f32
    %320 = vector.broadcast %cst_126 : f32 to vector<16x128xf32>
    %321 = arith.subf %320, %319 : vector<16x128xf32>
    %cst_127 = arith.constant 0.000000e+00 : f32
    %322 = vector.broadcast %cst_127 : f32 to vector<16x128xf32>
    %323 = arith.cmpf olt, %293, %322 : vector<16x128xf32>
    %cst_128 = arith.constant 0.000000e+00 : f32
    %324 = vector.broadcast %cst_128 : f32 to vector<16x128xf32>
    %325 = arith.subf %324, %321 : vector<16x128xf32>
    %326 = arith.select %323, %325, %321 : vector<16x128xi1>, vector<16x128xf32>
    %cst_129 = arith.constant 1.000000e+00 : f32
    %327 = vector.broadcast %cst_129 : f32 to vector<16x128xf32>
    %328 = arith.addf %327, %326 : vector<16x128xf32>
    %329 = arith.mulf %291, %328 : vector<16x128xf32>
    %c0_130 = arith.constant 0 : index
    %c0_131 = arith.constant 0 : index
    %330 = vector.load %arg6[%c0_130, %c0_131] : memref<128x32xf32, #tpu.memory_space<vmem>>, vector<128x32xf32>
    %cst_132 = arith.constant dense<0.000000e+00> : vector<16x32xf32>
    %331 = tpu.matmul %329, %330, %cst_132 {dimension_numbers = #tpu.dot_dimension_numbers<[1], [0], [0], [1], [0, 0, 1, 1], [], []>} : vector<16x128xf32>, vector<128x32xf32>, vector<16x32xf32> -> vector<16x32xf32>
    %332 = vector.broadcast %10 : vector<1x32xf32> to vector<16x32xf32>
    %333 = arith.addf %331, %332 : vector<16x32xf32>
    %cst_133 = arith.constant 5.000000e-01 : f32
    %334 = vector.broadcast %cst_133 : f32 to vector<16x32xf32>
    %335 = arith.mulf %334, %333 : vector<16x32xf32>
    %cst_134 = arith.constant 0.707106769 : f32
    %336 = vector.broadcast %cst_134 : f32 to vector<16x32xf32>
    %337 = arith.mulf %333, %336 : vector<16x32xf32>
    %338 = math.absf %337 : vector<16x32xf32>
    %cst_135 = arith.constant 0.327591091 : f32
    %339 = vector.broadcast %cst_135 : f32 to vector<16x32xf32>
    %340 = arith.mulf %339, %338 : vector<16x32xf32>
    %cst_136 = arith.constant 1.000000e+00 : f32
    %341 = vector.broadcast %cst_136 : f32 to vector<16x32xf32>
    %342 = arith.addf %341, %340 : vector<16x32xf32>
    %cst_137 = arith.constant 1.000000e+00 : f32
    %343 = vector.broadcast %cst_137 : f32 to vector<16x32xf32>
    %344 = arith.divf %343, %342 : vector<16x32xf32>
    %cst_138 = arith.constant 1.06140542 : f32
    %345 = vector.broadcast %cst_138 : f32 to vector<16x32xf32>
    %346 = arith.mulf %345, %344 : vector<16x32xf32>
    %cst_139 = arith.constant -1.45315206 : f32
    %347 = vector.broadcast %cst_139 : f32 to vector<16x32xf32>
    %348 = arith.addf %346, %347 : vector<16x32xf32>
    %349 = arith.mulf %348, %344 : vector<16x32xf32>
    %cst_140 = arith.constant 1.42141378 : f32
    %350 = vector.broadcast %cst_140 : f32 to vector<16x32xf32>
    %351 = arith.addf %349, %350 : vector<16x32xf32>
    %352 = arith.mulf %351, %344 : vector<16x32xf32>
    %cst_141 = arith.constant -0.284496725 : f32
    %353 = vector.broadcast %cst_141 : f32 to vector<16x32xf32>
    %354 = arith.addf %352, %353 : vector<16x32xf32>
    %355 = arith.mulf %354, %344 : vector<16x32xf32>
    %cst_142 = arith.constant 0.254829586 : f32
    %356 = vector.broadcast %cst_142 : f32 to vector<16x32xf32>
    %357 = arith.addf %355, %356 : vector<16x32xf32>
    %358 = arith.mulf %357, %344 : vector<16x32xf32>
    %cst_143 = arith.constant 0.000000e+00 : f32
    %359 = vector.broadcast %cst_143 : f32 to vector<16x32xf32>
    %360 = arith.subf %359, %338 : vector<16x32xf32>
    %361 = arith.mulf %360, %338 : vector<16x32xf32>
    %362 = math.exp %361 : vector<16x32xf32>
    %363 = arith.mulf %358, %362 : vector<16x32xf32>
    %cst_144 = arith.constant 1.000000e+00 : f32
    %364 = vector.broadcast %cst_144 : f32 to vector<16x32xf32>
    %365 = arith.subf %364, %363 : vector<16x32xf32>
    %cst_145 = arith.constant 0.000000e+00 : f32
    %366 = vector.broadcast %cst_145 : f32 to vector<16x32xf32>
    %367 = arith.cmpf olt, %337, %366 : vector<16x32xf32>
    %cst_146 = arith.constant 0.000000e+00 : f32
    %368 = vector.broadcast %cst_146 : f32 to vector<16x32xf32>
    %369 = arith.subf %368, %365 : vector<16x32xf32>
    %370 = arith.select %367, %369, %365 : vector<16x32xi1>, vector<16x32xf32>
    %cst_147 = arith.constant 1.000000e+00 : f32
    %371 = vector.broadcast %cst_147 : f32 to vector<16x32xf32>
    %372 = arith.addf %371, %370 : vector<16x32xf32>
    %373 = arith.mulf %335, %372 : vector<16x32xf32>
    %374 = arith.addf %373, %263 : vector<16x32xf32>
    %c0_148 = arith.constant 0 : index
    %c0_149 = arith.constant 0 : index
    %375 = vector.load %arg9[%c0_148, %c0_149] : memref<16x32xf32, #tpu.memory_space<vmem>>, vector<16x32xf32>
    tpu.vector_store %arg9[%c0_148, %c0_149], %374 {strides = array<i32>} : memref<16x32xf32, #tpu.memory_space<vmem>>, vector<16x32xf32>,
    return
  }
  func.func @transform_0(%arg0: i32) -> (i32, i32) {
    %c0_i32 = arith.constant 0 : i32
    %c0_i32_0 = arith.constant 0 : i32
    %c0_i32_1 = arith.constant 0 : i32
    return %c0_i32, %c0_i32_0 : i32, i32
  }
  func.func @transform_1(%arg0: i32) -> (i32, i32) {
    %c0_i32 = arith.constant 0 : i32
    %c0_i32_0 = arith.constant 0 : i32
    %c0_i32_1 = arith.constant 0 : i32
    return %c0_i32, %c0_i32_0 : i32, i32
  }
  func.func @transform_2(%arg0: i32) -> (i32, i32) {
    %c0_i32 = arith.constant 0 : i32
    %c0_i32_0 = arith.constant 0 : i32
    %c0_i32_1 = arith.constant 0 : i32
    return %c0_i32, %c0_i32_0 : i32, i32
  }
  func.func @transform_3(%arg0: i32) -> (i32, i32) {
    %c0_i32 = arith.constant 0 : i32
    %c0_i32_0 = arith.constant 0 : i32
    %c0_i32_1 = arith.constant 0 : i32
    return %c0_i32, %c0_i32_0 : i32, i32
  }
  func.func @transform_4(%arg0: i32) -> (i32, i32) {
    %c0_i32 = arith.constant 0 : i32
    %c0_i32_0 = arith.constant 0 : i32
    %c0_i32_1 = arith.constant 0 : i32
    return %c0_i32, %c0_i32_0 : i32, i32
  }
  func.func @transform_5(%arg0: i32) -> (i32, i32) {
    %c0_i32 = arith.constant 0 : i32
    %c0_i32_0 = arith.constant 0 : i32
    %c0_i32_1 = arith.constant 0 : i32
    return %c0_i32, %c0_i32_0 : i32, i32
  }
  func.func @transform_6(%arg0: i32) -> (i32, i32) {
    %c0_i32 = arith.constant 0 : i32
    %c0_i32_0 = arith.constant 0 : i32
    %c0_i32_1 = arith.constant 0 : i32
    return %c0_i32, %c0_i32_0 : i32, i32
  }
  func.func @transform_7(%arg0: i32) -> (i32, i32) {
    %c0_i32 = arith.constant 0 : i32
    %c0_i32_0 = arith.constant 0 : i32
    %c0_i32_1 = arith.constant 0 : i32
    return %c0_i32, %c0_i32_0 : i32, i32
  }
  func.func @transform_8(%arg0: i32) -> (i32, i32) {
    %c0_i32 = arith.constant 0 : i32
    %c0_i32_0 = arith.constant 0 : i32
    %c0_i32_1 = arith.constant 0 : i32
    return %c0_i32, %c0_i32_0 : i32, i32
  }
}

</mosaic_0001>

<bundles_post_ra>
// kernel: tpu_custom_call.1
= control target key start
LH: loop header
LB: loop body
LE: loop exit
PB: predicated region body
PF: predicated region fallthrough
CT: control target
= control target key end

     0   :  { %vm112_vm0 = vcmask 261120   ;;  %s6254_s0 = inlined_call_operand.vmem [shape: f32[16,32], index: 0, kind: input, shape index: {}]   ;;  %s6255_s1 = inlined_call_operand.vmem [shape: f32[16,16], index: 1, kind: input, shape index: {}]   ;;  %s6256_s2 = inlined_call_operand.vmem [shape: f32[128,32], index: 2, kind: input, shape index: {}]   ;;  %s6257_s3 = inlined_call_operand.vmem [shape: f32[96,32], index: 3, kind: input, shape index: {}]   ;;  %s6258_s4 = inlined_call_operand.vmem [shape: f32[32,128], index: 4, kind: input, shape index: {}]   ;;  %s6259_s5 = inlined_call_operand.vmem [shape: f32[128,32], index: 5, kind: input, shape index: {}]   ;;  %s6260_s6 = inlined_call_operand.vmem [shape: f32[320,32], index: 6, kind: input, shape index: {}]   ;;  %s6261_s7 = inlined_call_operand.vmem [shape: f32[16,128], index: 7, kind: input, shape index: {}]   ;;  %s6262_s8 = inlined_call_operand.hbm [shape: f32[16,32], index: 8, kind: output, shape index: {}]  }
   0x1   :  { %v5551_v0 = vld [vmem:[%s6254_s0] sm:$0xff]  ;;  %v5556_v1 = vld [vmem:[%s6254_s0 + $0x8] sm:$0xff] }
   0x2   :  { %13 = vsyncpa [#allocation3], 0  ;;  %v113_v2 = vsel %vm112_vm0, %v5551_v0, 0.0  ;;  %v116_v3 = vsel %vm112_vm0, %v5556_v1, 0.0  ;;  %v84_v14 = vld [vmem:[%s6256_s2] sm:$0xff]  ;;  %v85_v15 = vld [vmem:[%s6256_s2 + $0x8] sm:$0xff] }
   0x3   :  { %114 = vadd.xlane.f32.xlu0 %v113_v2  ;;  %v86_v16 = vld [vmem:[%s6256_s2 + $0x10] sm:$0xff]  ;;  %v5005_v17 = vpack.c.bf16 %v85_v15, %v84_v14  ;;  %v87_v18 = vld [vmem:[%s6256_s2 + $0x18] sm:$0xff]  ;;  %v88_v20 = vld [vmem:[%s6256_s2 + $0x20] sm:$0xff]  ;;  %vm2066_vm1 = vcmask 130048  }
   0x4   :  { %v5009_v19 = vpack.c.bf16 %v87_v18, %v86_v16  ;;  %v89_v21 = vld [vmem:[%s6256_s2 + $0x28] sm:$0xff]  ;;  %v4137_v30 = vld [vmem:[%s6261_s7] ss:$0 sm:$0xff]  ;;  %v4138_v32 = vld [vmem:[%s6261_s7 + $0x1] ss:$0 sm:$0xff] }
   0x5   :  { %5006 = vmatprep.subr.bf16.mxu0 %v5005_v17  ;;  %v5013_v22 = vpack.c.bf16 %v89_v21, %v88_v20  ;;  %v90_v37 = vld [vmem:[%s6256_s2 + $0x30] sm:$0xff]  ;;  %v91_v38 = vld [vmem:[%s6256_s2 + $0x38] sm:$0xff]  ;;  %v92_v42 = vld [vmem:[%s6256_s2 + $0x40] sm:$0xff] }
   0x6   :  { %5008 = vmatpush3.bf16.msra.mxu0 %v5005_v17  ;;  %v5017_v41 = vpack.c.bf16 %v91_v38, %v90_v37  ;;  %v93_v43 = vld [vmem:[%s6256_s2 + $0x48] sm:$0xff]  ;;  %v94_v45 = vld [vmem:[%s6256_s2 + $0x50] sm:$0xff]  ;;  %v95_v46 = vld [vmem:[%s6256_s2 + $0x58] sm:$0xff] }
   0x7   :  { %117 = vadd.xlane.f32.xlu0 %v116_v3  ;;  %5010 = vmatprep.subr.bf16.mxu0 %v5009_v19  ;;  %v5021_v44 = vpack.c.bf16 %v93_v43, %v92_v42  ;;  %v5025_v47 = vpack.c.bf16 %v95_v46, %v94_v45  ;;  %v52_v48 = vld [vmem:[%s6260_s6 + $0x40] sm:$0xff]  ;;  %v53_v49 = vld [vmem:[%s6260_s6 + $0x48] sm:$0xff]  ;;  %v54_v51 = vld [vmem:[%s6260_s6 + $0x50] sm:$0xff] }
   0x8   :  { %v5620_v50 = vpack.c.bf16 %v53_v49, %v52_v48  ;;  %v55_v52 = vld [vmem:[%s6260_s6 + $0x58] sm:$0xff]  ;;  %v56_v54 = vld [vmem:[%s6260_s6 + $0x60] sm:$0xff]  ;;  %v57_v55 = vld [vmem:[%s6260_s6 + $0x68] sm:$0xff] }
   0x9   :  { %v5629_v53 = vpack.c.bf16 %v55_v52, %v54_v51  ;;  %v5640_v56 = vpack.c.bf16 %v57_v55, %v56_v54  ;;  %v44_v57 = vld [vmem:[%s6260_s6] sm:$0xff]  ;;  %v45_v58 = vld [vmem:[%s6260_s6 + $0x8] sm:$0xff]  ;;  %v58_v62 = vld [vmem:[%s6260_s6 + $0x70] sm:$0xff] }
   0xa   :  { %5012 = vmatpush3.bf16.msra.mxu0 %v5009_v19  ;;  %5030 = vmatprep.subr.bf16.mxu1 %v5620_v50  ;;  %v5649_v59 = vpack.c.bf16 %v45_v58, %v44_v57  ;;  %v59_v63 = vld [vmem:[%s6260_s6 + $0x78] sm:$0xff]  ;;  %v65_v14 = vld [vmem:[%s6260_s6 + $0xa8] sm:$0xff]  ;;  %v66_v16 = vld [vmem:[%s6260_s6 + $0xb0] sm:$0xff] }
   0xb   :  { %5014 = vmatprep.subr.bf16.mxu0 %v5013_v22  ;;  %5032 = vmatpush3.bf16.msra.mxu1 %v5620_v50  ;;  %v67_v17 = vld [vmem:[%s6260_s6 + $0xb8] sm:$0xff]  ;;  %v68_v19 = vld [vmem:[%s6260_s6 + $0xc0] sm:$0xff]  ;;  %v69_v20 = vld [vmem:[%s6260_s6 + $0xc8] sm:$0xff] }
   0xc   :  { %5034 = vmatprep.subr.bf16.mxu1 %v5629_v53  ;;  %v5721_v18 = vpack.c.bf16 %v67_v17, %v66_v16  ;;  %v5735_v21 = vpack.c.bf16 %v69_v20, %v68_v19  ;;  %v80_v37 = vld [vmem:[%s6260_s6 + $0x120] sm:$0xff]  ;;  %v81_v38 = vld [vmem:[%s6260_s6 + $0x128] sm:$0xff]  ;;  %v50_v46 = vld [vmem:[%s6260_s6 + $0x30] sm:$0xff] }
   0xd   :  { %v48_v43 = vld [vmem:[%s6260_s6 + $0x20] sm:$0xff]  ;;  %v46_v49 = vld [vmem:[%s6260_s6 + $0x10] sm:$0xff]  ;;  %v47_v51 = vld [vmem:[%s6260_s6 + $0x18] sm:$0xff] }
   0xe   :  { %v5858_v52 = vpack.c.bf16 %v47_v51, %v46_v49 }
   0xf   :  { %5036 = vmatpush3.bf16.msra.mxu1 %v5629_v53 }
  0x10   :  { %5046 = vmatprep.subr.bf16.mxu1 %v5640_v56 }
  0x90   :  { %v115_v4 = vpop.xlane.xlu0 %114 }
  0x91   :  { %v120_v5 = vmul.f32 0.03125, %v115_v4  ;;  %v5667_v4 = vpack.c.bf16 %v59_v63, %v58_v62 }
  0x93   :  { %v122_v6 = vsub.f32 %v5551_v0, %v120_v5  ;;  %v60_v5 = vld [vmem:[%s6260_s6 + $0x80] sm:$0xff] }
  0x94   :  { %v118_v7 = vpop.xlane.xlu0 %117 }
  0x95   :  { %v121_v8 = vmul.f32 0.03125, %v118_v7  ;;  %v124_v9 = vmul.f32 %v122_v6, %v122_v6 }
  0x97   :  { %v123_v10 = vsub.f32 %v5556_v1, %v121_v8  ;;  %v126_v11 = vsel %vm112_vm0, %v124_v9, 0.0  ;;  %v62_v8 = vld [vmem:[%s6260_s6 + $0x90] sm:$0xff]  ;;  %v63_v9 = vld [vmem:[%s6260_s6 + $0x98] sm:$0xff] }
  0x98   :  { %127 = vadd.xlane.f32.xlu1 %v126_v11 }
  0x99   :  { %v125_v12 = vmul.f32 %v123_v10, %v123_v10 }
  0x9b   :  { %v129_v13 = vsel %vm112_vm0, %v125_v12, 0.0  ;;  %v5697_v12 = vpack.c.bf16 %v63_v9, %v62_v8 }
  0x9c   :  { %130 = vadd.xlane.f32.xlu1 %v129_v13  ;;  %v64_v13 = vld [vmem:[%s6260_s6 + $0xa0] sm:$0xff] }
  0x9d   :  { %v5711_v15 = vpack.c.bf16 %v65_v14, %v64_v13 }
 0x125   :  { %v128_v23 = vpop.xlane.xlu1 %127 }
 0x126   :  { %v132_v24 = vmul.f32 0.03125, %v128_v23  ;;  %v71_v23 = vld [vmem:[%s6260_s6 + $0xd8] sm:$0xff] }
 0x128   :  { %v134_v25 = vadd.f32 1e-05, %v132_v24 }
 0x129   :  { %v131_v26 = vpop.xlane.xlu1 %130 }
 0x12a   :  { %5376 = vrsqrt.f32 %v134_v25  ;;  %v133_v27 = vmul.f32 0.03125, %v131_v26  ;;  %v72_v25 = vld [vmem:[%s6260_s6 + $0xe0] sm:$0xff]  ;;  %v73_v26 = vld [vmem:[%s6260_s6 + $0xe8] sm:$0xff] }
 0x12c   :  { %v135_v28 = vadd.f32 1e-05, %v133_v27  ;;  %v5759_v27 = vpack.c.bf16 %v73_v26, %v72_v25 }
 0x12e   :  { %5378 = vrsqrt.f32 %v135_v28  ;;  %v74_v28 = vld [vmem:[%s6260_s6 + $0xf0] sm:$0xff] }
 0x134   :  { %v5377_v29 = vpop.eup %5376 }
 0x135   :  { %v138_v31 = vmul.f32 %v5377_v29, %v122_v6  ;;  %v61_v6 = vld [vmem:[%s6260_s6 + $0x88] sm:$0xff]  ;;  %v75_v29 = vld [vmem:[%s6260_s6 + $0xf8] sm:$0xff] }
 0x136   :  { %v5683_v7 = vpack.c.bf16 %v61_v6, %v60_v5 }
 0x137   :  { %v144_v33 = vmul.f32 %v4137_v30, %v138_v31  ;;  %v76_v31 = vld [vmem:[%s6260_s6 + $0x100] sm:$0xff] }
 0x138   :  { %v5379_v34 = vpop.eup %5378 }
 0x139   :  { %v139_v35 = vmul.f32 %v5379_v34, %v123_v10  ;;  %v150_v36 = vadd.f32 %v4138_v32, %v144_v33  ;;  %v78_v34 = vld [vmem:[%s6260_s6 + $0x110] sm:$0xff] }
 0x13b   :  { %v145_v39 = vmul.f32 %v4137_v30, %v139_v35  ;;  %4513 = vmatprep.mubr.msk.f32.mxu0 %vm112_vm0, %v150_v36  ;;  %v5769_v30 = vpack.c.bf16 %v75_v29, %v74_v28  ;;  %v79_v35 = vld [vmem:[%s6260_s6 + $0x118] sm:$0xff] }
 0x13d   :  { %v151_v40 = vadd.f32 %v4138_v32, %v145_v39  ;;  %v77_v32 = vld [vmem:[%s6260_s6 + $0x108] sm:$0xff]  ;;  %v5807_v39 = vpack.c.bf16 %v81_v38, %v80_v37 }
 0x13e   :  { %v5783_v33 = vpack.c.bf16 %v77_v32, %v76_v31 }
 0x13f   :  { %4514 = vmatmul.mubr.msk.f32.vlgmr.msra.gmra.mrb[0].mxu0 %vm112_vm0, %v151_v40 }
 0x140   :  { %5016 = vmatpush3.bf16.msra.mxu0 %v5013_v22  ;;  %4524 = vmatprep.mubr.msk.f32.mxu0 %vm112_vm0, %v150_v36  ;;  %v70_v22 = vld [vmem:[%s6260_s6 + $0xd0] sm:$0xff] }
 0x141   :  { %5018 = vmatprep.subr.bf16.mxu0 %v5017_v41  ;;  %v5745_v24 = vpack.c.bf16 %v71_v23, %v70_v22 }
 0x144   :  { %5020 = vmatpush3.bf16.msra.mxu0 %v5017_v41  ;;  %v83_v41 = vld [vmem:[%s6260_s6 + $0x138] sm:$0xff] }
 0x145   :  { %5022 = vmatprep.subr.bf16.mxu0 %v5021_v44 }
 0x147   :  { %4525 = vmatmul.mubr.msk.f32.vlgmr.msra.gmra.mrb[2].mxu0 %vm112_vm0, %v151_v40 }
 0x148   :  { %5024 = vmatpush3.bf16.msra.mxu0 %v5021_v44  ;;  %4535 = vmatprep.mubr.msk.f32.mxu0 %vm112_vm0, %v150_v36  ;;  %v5793_v36 = vpack.c.bf16 %v79_v35, %v78_v34  ;;  %v49_v44 = vld [vmem:[%s6260_s6 + $0x28] sm:$0xff] }
 0x149   :  { %5026 = vmatprep.subr.bf16.mxu0 %v5025_v47  ;;  %v5831_v45 = vpack.c.bf16 %v49_v44, %v48_v43  ;;  %v96_v43 = vld [vmem:[%s6256_s2 + $0x60] sm:$0xff] }
 0x14c   :  { %5028 = vmatpush3.bf16.msra.mxu0 %v5025_v47  ;;  %v51_v47 = vld [vmem:[%s6260_s6 + $0x38] sm:$0xff] }
 0x14d   :  { %5038 = vmatprep.subr.bf16.mxu0 %v5649_v59  ;;  %v5841_v48 = vpack.c.bf16 %v51_v47, %v50_v46  ;;  %v99_v46 = vld [vmem:[%s6256_s2 + $0x78] sm:$0xff] }
 0x14f   :  { %4536 = vmatmul.mubr.msk.f32.vlgmr.msra.gmra.mrb[4].mxu0 %vm112_vm0, %v151_v40  ;;  %v82_v40 = vld [vmem:[%s6260_s6 + $0x130] sm:$0xff] }
 0x150   :  { %5040 = vmatpush3.bf16.msra.mxu0 %v5649_v59  ;;  %v5817_v42 = vpack.c.bf16 %v83_v41, %v82_v40 }
 0x151   :  { %5042 = vmatprep.subr.bf16.mxu0 %v5858_v52 }
 0x154   :  { %5044 = vmatpush3.bf16.msra.mxu0 %v5858_v52 }
 0x155   :  { %5054 = vmatprep.subr.bf16.mxu0 %v5649_v59 }
 0x212   :  { %v5653_v60 = vpop.f32.mrb[0].mxu0 }
 0x213   :  { %v5655_v61 = vpop.f32.mrb[1].mxu0 }
 0x21a   :  { %v5663_v2 = vpop.f32.mrb[2].mxu0 }
 0x21b   :  { %v5665_v3 = vpop.f32.mrb[3].mxu0 }
 0x21c   :  { %4546 = vmatprep.mubr.msk.f32.mxu1 %vm112_vm0, %v5665_v3 }
 0x21d   :  { %4547 = vmatmul.mubr.msk.f32.vlgmr.msra.gmra.mrb[0].mxu1 %vm112_vm0, %v5663_v2 }
 0x21e   :  { %5048 = vmatpush3.bf16.msra.mxu1 %v5640_v56  ;;  %4568 = vmatprep.mubr.msk.f32.mxu1 %vm112_vm0, %v5665_v3 }
 0x21f   :  { %5050 = vmatprep.subr.bf16.mxu1 %v5667_v4 }
 0x222   :  { %5052 = vmatpush3.bf16.msra.mxu1 %v5667_v4  ;;  %v5692_v10 = vpop.f32.mrb[4].mxu0 }
 0x223   :  { %v5694_v11 = vpop.f32.mrb[5].mxu0  ;;  %5062 = vmatprep.subr.bf16.mxu1 %v5683_v7 }
 0x225   :  { %4569 = vmatmul.mubr.msk.f32.vlgmr.msra.gmra.mrb[2].mxu1 %vm112_vm0, %v5663_v2 }
 0x226   :  { %5064 = vmatpush3.bf16.msra.mxu1 %v5683_v7  ;;  %4590 = vmatprep.mubr.msk.f32.mxu1 %vm112_vm0, %v5665_v3 }
 0x227   :  { %5066 = vmatprep.subr.bf16.mxu1 %v5697_v12 }
 0x22a   :  { %5068 = vmatpush3.bf16.msra.mxu1 %v5697_v12 }
 0x22b   :  { %5078 = vmatprep.subr.bf16.mxu1 %v5711_v15 }
 0x22d   :  { %4591 = vmatmul.mubr.msk.f32.vlgmr.msra.gmra.mrb[4].mxu1 %vm112_vm0, %v5663_v2 }
 0x22e   :  { %5080 = vmatpush3.bf16.msra.mxu1 %v5711_v15  ;;  %4612 = vmatprep.mubr.msk.f32.mxu1 %vm112_vm0, %v5665_v3 }
 0x22f   :  { %5082 = vmatprep.subr.bf16.mxu1 %v5721_v18 }
 0x232   :  { %5084 = vmatpush3.bf16.msra.mxu1 %v5721_v18 }
 0x233   :  { %5094 = vmatprep.subr.bf16.mxu1 %v5735_v21 }
 0x235   :  { %4613 = vmatmul.mubr.msk.f32.vlgmr.msra.gmra.mrb[6].mxu1 %vm112_vm0, %v5663_v2 }
 0x236   :  { %5096 = vmatpush3.bf16.msra.mxu1 %v5735_v21  ;;  %4634 = vmatprep.mubr.msk.f32.mxu1 %vm112_vm0, %v5665_v3 }
 0x237   :  { %5098 = vmatprep.subr.bf16.mxu1 %v5745_v24 }
 0x23a   :  { %5100 = vmatpush3.bf16.msra.mxu1 %v5745_v24 }
 0x23b   :  { %5110 = vmatprep.subr.bf16.mxu1 %v5759_v27 }
 0x23d   :  { %4635 = vmatmul.mubr.msk.f32.vlgmr.msra.gmra.mrb[8].mxu1 %vm112_vm0, %v5663_v2 }
 0x23e   :  { %5112 = vmatpush3.bf16.msra.mxu1 %v5759_v27  ;;  %4656 = vmatprep.mubr.msk.f32.mxu1 %vm112_vm0, %v5665_v3 }
 0x23f   :  { %5114 = vmatprep.subr.bf16.mxu1 %v5769_v30 }
 0x242   :  { %5116 = vmatpush3.bf16.msra.mxu1 %v5769_v30 }
 0x243   :  { %5126 = vmatprep.subr.bf16.mxu1 %v5783_v33 }
 0x245   :  { %4657 = vmatmul.mubr.msk.f32.vlgmr.msra.gmra.mrb[10].mxu1 %vm112_vm0, %v5663_v2 }
 0x246   :  { %5128 = vmatpush3.bf16.msra.mxu1 %v5783_v33  ;;  %4678 = vmatprep.mubr.msk.f32.mxu1 %vm112_vm0, %v5665_v3 }
 0x247   :  { %5130 = vmatprep.subr.bf16.mxu1 %v5793_v36 }
 0x24a   :  { %5132 = vmatpush3.bf16.msra.mxu1 %v5793_v36 }
 0x24b   :  { %5142 = vmatprep.subr.bf16.mxu1 %v5807_v39 }
 0x24d   :  { %4679 = vmatmul.mubr.msk.f32.vlgmr.msra.gmra.mrb[12].mxu1 %vm112_vm0, %v5663_v2 }
 0x24e   :  { %5144 = vmatpush3.bf16.msra.mxu1 %v5807_v39  ;;  %4700 = vmatprep.mubr.msk.f32.mxu1 %vm112_vm0, %v5665_v3 }
 0x24f   :  { %5146 = vmatprep.subr.bf16.mxu1 %v5817_v42 }
 0x252   :  { %5148 = vmatpush3.bf16.msra.mxu1 %v5817_v42 }
 0x253   :  { %5158 = vmatprep.subr.bf16.mxu1 %v5831_v45 }
 0x255   :  { %4701 = vmatmul.mubr.msk.f32.vlgmr.msra.gmra.mrb[14].mxu1 %vm112_vm0, %v5663_v2 }
 0x256   :  { %5160 = vmatpush3.bf16.msra.mxu1 %v5831_v45  ;;  %4722 = vmatprep.mubr.msk.f32.mxu1 %vm112_vm0, %v5694_v11 }
 0x257   :  { %5162 = vmatprep.subr.bf16.mxu1 %v5841_v48 }
 0x25a   :  { %5164 = vmatpush3.bf16.msra.mxu1 %v5841_v48 }
 0x25d   :  { %4723 = vmatmul.mubr.msk.f32.vlgmr.msra.gmra.mrb[16].mxu1 %vm112_vm0, %v5692_v10 }
 0x2f0   :  { %v4548_v54 = vpop.f32.mrb[0].mxu1 }
 0x2f1   :  { %v465_v55 = vmul.f32 %v4548_v54, %v5653_v60  ;;  %v455_v57 = vpop.f32.mrb[1].mxu1 }
 0x2f2   :  { %v464_v58 = vmul.f32 %v455_v57, %v5655_v61 }
 0x2f4   :  { %4557 = vmatprep.mubr.msk.f32.mxu0 %vm112_vm0, %v464_v58 }
 0x2f5   :  { %4558 = vmatmul.mubr.msk.f32.vlgmr.msra.gmra.mrb[6].mxu0 %vm112_vm0, %v465_v55 }
 0x2f6   :  { %5056 = vmatpush3.bf16.msra.mxu0 %v5649_v59 }
 0x2f7   :  { %5058 = vmatprep.subr.bf16.mxu0 %v5858_v52 }
 0x2f8   :  { %v4570_v62 = vpop.f32.mrb[2].mxu1 }
 0x2f9   :  { %v625_v63 = vmul.f32 %v4570_v62, %v5653_v60  ;;  %v615_v2 = vpop.f32.mrb[3].mxu1 }
 0x2fa   :  { %v624_v3 = vmul.f32 %v615_v2, %v5655_v61  ;;  %5060 = vmatpush3.bf16.msra.mxu0 %v5858_v52 }
 0x2fb   :  { %5070 = vmatprep.subr.bf16.mxu0 %v5649_v59 }
 0x2fc   :  { %4579 = vmatprep.mubr.msk.f32.mxu0 %vm112_vm0, %v624_v3 }
 0x2fd   :  { %4580 = vmatmul.mubr.msk.f32.vlgmr.msra.gmra.mrb[8].mxu0 %vm112_vm0, %v625_v63 }
 0x2fe   :  { %5072 = vmatpush3.bf16.msra.mxu0 %v5649_v59 }
 0x2ff   :  { %5074 = vmatprep.subr.bf16.mxu0 %v5858_v52 }
 0x300   :  { %v4592_v5 = vpop.f32.mrb[4].mxu1 }
 0x301   :  { %v785_v6 = vmul.f32 %v4592_v5, %v5653_v60  ;;  %v775_v8 = vpop.f32.mrb[5].mxu1 }
 0x302   :  { %v784_v9 = vmul.f32 %v775_v8, %v5655_v61  ;;  %5076 = vmatpush3.bf16.msra.mxu0 %v5858_v52 }
 0x303   :  { %5086 = vmatprep.subr.bf16.mxu0 %v5649_v59 }
 0x304   :  { %4601 = vmatprep.mubr.msk.f32.mxu0 %vm112_vm0, %v784_v9 }
 0x305   :  { %4602 = vmatmul.mubr.msk.f32.vlgmr.msra.gmra.mrb[10].mxu0 %vm112_vm0, %v785_v6 }
 0x306   :  { %5088 = vmatpush3.bf16.msra.mxu0 %v5649_v59 }
 0x307   :  { %5090 = vmatprep.subr.bf16.mxu0 %v5858_v52 }
 0x308   :  { %v4614_v10 = vpop.f32.mrb[6].mxu1 }
 0x309   :  { %v945_v11 = vmul.f32 %v4614_v10, %v5653_v60  ;;  %v935_v13 = vpop.f32.mrb[7].mxu1 }
 0x30a   :  { %v944_v14 = vmul.f32 %v935_v13, %v5655_v61  ;;  %5092 = vmatpush3.bf16.msra.mxu0 %v5858_v52 }
 0x30b   :  { %5102 = vmatprep.subr.bf16.mxu0 %v5649_v59 }
 0x30c   :  { %4623 = vmatprep.mubr.msk.f32.mxu0 %vm112_vm0, %v944_v14 }
 0x30d   :  { %4624 = vmatmul.mubr.msk.f32.vlgmr.msra.gmra.mrb[12].mxu0 %vm112_vm0, %v945_v11 }
 0x30e   :  { %5104 = vmatpush3.bf16.msra.mxu0 %v5649_v59 }
 0x30f   :  { %5106 = vmatprep.subr.bf16.mxu0 %v5858_v52 }
 0x310   :  { %v4636_v16 = vpop.f32.mrb[8].mxu1 }
 0x311   :  { %v1105_v17 = vmul.f32 %v4636_v16, %v5653_v60  ;;  %v1095_v19 = vpop.f32.mrb[9].mxu1 }
 0x312   :  { %v1104_v20 = vmul.f32 %v1095_v19, %v5655_v61  ;;  %5108 = vmatpush3.bf16.msra.mxu0 %v5858_v52 }
 0x313   :  { %5118 = vmatprep.subr.bf16.mxu0 %v5649_v59 }
 0x314   :  { %4645 = vmatprep.mubr.msk.f32.mxu0 %vm112_vm0, %v1104_v20 }
 0x315   :  { %4646 = vmatmul.mubr.msk.f32.vlgmr.msra.gmra.mrb[14].mxu0 %vm112_vm0, %v1105_v17 }
 0x316   :  { %5120 = vmatpush3.bf16.msra.mxu0 %v5649_v59 }
 0x317   :  { %5122 = vmatprep.subr.bf16.mxu0 %v5858_v52 }
 0x318   :  { %v4658_v22 = vpop.f32.mrb[10].mxu1 }
 0x319   :  { %v1265_v23 = vmul.f32 %v4658_v22, %v5653_v60  ;;  %v1255_v25 = vpop.f32.mrb[11].mxu1 }
 0x31a   :  { %v1264_v26 = vmul.f32 %v1255_v25, %v5655_v61  ;;  %5124 = vmatpush3.bf16.msra.mxu0 %v5858_v52 }
 0x31b   :  { %5134 = vmatprep.subr.bf16.mxu0 %v5649_v59 }
 0x31c   :  { %4667 = vmatprep.mubr.msk.f32.mxu0 %vm112_vm0, %v1264_v26 }
 0x31d   :  { %4668 = vmatmul.mubr.msk.f32.vlgmr.msra.gmra.mrb[16].mxu0 %vm112_vm0, %v1265_v23 }
 0x31e   :  { %5136 = vmatpush3.bf16.msra.mxu0 %v5649_v59 }
 0x31f   :  { %5138 = vmatprep.subr.bf16.mxu0 %v5858_v52 }
 0x320   :  { %v4680_v28 = vpop.f32.mrb[12].mxu1 }
 0x321   :  { %v1425_v29 = vmul.f32 %v4680_v28, %v5653_v60  ;;  %v1415_v31 = vpop.f32.mrb[13].mxu1 }
 0x322   :  { %v1424_v32 = vmul.f32 %v1415_v31, %v5655_v61  ;;  %5140 = vmatpush3.bf16.msra.mxu0 %v5858_v52 }
 0x323   :  { %5150 = vmatprep.subr.bf16.mxu0 %v5649_v59 }
 0x324   :  { %4689 = vmatprep.mubr.msk.f32.mxu0 %vm112_vm0, %v1424_v32 }
 0x325   :  { %4690 = vmatmul.mubr.msk.f32.vlgmr.msra.gmra.mrb[18].mxu0 %vm112_vm0, %v1425_v29 }
 0x326   :  { %5152 = vmatpush3.bf16.msra.mxu0 %v5649_v59 }
 0x327   :  { %5154 = vmatprep.subr.bf16.mxu0 %v5858_v52 }
 0x328   :  { %v4702_v34 = vpop.f32.mrb[14].mxu1 }
 0x329   :  { %v1585_v35 = vmul.f32 %v4702_v34, %v5653_v60  ;;  %v1575_v37 = vpop.f32.mrb[15].mxu1  ;;  %v97_v60 = vld [vmem:[%s6256_s2 + $0x68] sm:$0xff] }
 0x32a   :  { %v1584_v38 = vmul.f32 %v1575_v37, %v5655_v61  ;;  %5156 = vmatpush3.bf16.msra.mxu0 %v5858_v52  ;;  %v98_v61 = vld [vmem:[%s6256_s2 + $0x70] sm:$0xff]  ;;  %v5165_v44 = vpack.c.bf16 %v97_v60, %v96_v43 }
 0x32b   :  { %v5169_v47 = vpack.c.bf16 %v99_v46, %v98_v61 }
 0x32c   :  { %4711 = vmatprep.mubr.msk.f32.mxu0 %vm112_vm0, %v1584_v38  ;;  %5166 = vmatprep.subr.bf16.mxu0 %v5165_v44 }
 0x32d   :  { %4712 = vmatmul.mubr.msk.f32.vlgmr.msra.gmra.mrb[20].mxu0 %vm112_vm0, %v1585_v35 }
 0x32e   :  { %5168 = vmatpush3.bf16.msra.mxu0 %v5165_v44 }
 0x32f   :  { %5170 = vmatprep.subr.bf16.mxu0 %v5169_v47 }
 0x330   :  { %v5922_v40 = vpop.f32.mrb[16].mxu1 }
 0x331   :  { %v5924_v41 = vpop.f32.mrb[17].mxu1 }
 0x332   :  { %5172 = vmatpush3.bf16.msra.mxu0 %v5169_v47 }
 0x3c8   :  { %v4559_v49 = vpop.f32.mrb[6].mxu0 }
 0x3c9   :  { %v538_v51 = vpop.f32.mrb[7].mxu0  ;;  %v548_v55 = vmul.f32 0.5, %v4559_v49 }
 0x3ca   :  { %v5938_v62 = vmul.f32 0.5, %v538_v51 }
 0x3d0   :  { %v4581_v54 = vpop.f32.mrb[8].mxu0 }
 0x3d1   :  { %v708_v57 = vmul.f32 0.5, %v4581_v54  ;;  %v698_v58 = vpop.f32.mrb[9].mxu0 }
 0x3d2   :  { %v5940_v63 = vmul.f32 0.5, %v698_v58 }
 0x3d3   :  { %v1670_v2 = vmax.f32 %v548_v55, %v708_v57 }
 0x3d4   :  { %v1669_v3 = vmax.f32 %v5938_v62, %v5940_v63 }
 0x3d8   :  { %v4603_v5 = vpop.f32.mrb[10].mxu0 }
 0x3d9   :  { %v868_v6 = vmul.f32 0.5, %v4603_v5  ;;  %v858_v8 = vpop.f32.mrb[11].mxu0 }
 0x3da   :  { %v5944_v9 = vmul.f32 0.5, %v858_v8 }
 0x3db   :  { %v1672_v10 = vmax.f32 %v1670_v2, %v868_v6 }
 0x3dc   :  { %v1671_v11 = vmax.f32 %v1669_v3, %v5944_v9 }
 0x3e0   :  { %v4625_v13 = vpop.f32.mrb[12].mxu0 }
 0x3e1   :  { %v1028_v14 = vmul.f32 0.5, %v4625_v13  ;;  %v1018_v16 = vpop.f32.mrb[13].mxu0 }
 0x3e2   :  { %v1027_v17 = vmul.f32 0.5, %v1018_v16 }
 0x3e3   :  { %v1674_v19 = vmax.f32 %v1672_v10, %v1028_v14 }
 0x3e4   :  { %v1673_v20 = vmax.f32 %v1671_v11, %v1027_v17 }
 0x3e8   :  { %v4647_v22 = vpop.f32.mrb[14].mxu0 }
 0x3e9   :  { %v1188_v23 = vmul.f32 0.5, %v4647_v22  ;;  %v1178_v25 = vpop.f32.mrb[15].mxu0 }
 0x3ea   :  { %v1187_v26 = vmul.f32 0.5, %v1178_v25 }
 0x3eb   :  { %v1676_v28 = vmax.f32 %v1674_v19, %v1188_v23 }
 0x3ec   :  { %v1675_v29 = vmax.f32 %v1673_v20, %v1187_v26 }
 0x3f0   :  { %v4669_v31 = vpop.f32.mrb[16].mxu0 }
 0x3f1   :  { %v1348_v32 = vmul.f32 0.5, %v4669_v31  ;;  %v1338_v34 = vpop.f32.mrb[17].mxu0 }
 0x3f2   :  { %v1347_v35 = vmul.f32 0.5, %v1338_v34 }
 0x3f3   :  { %v1678_v37 = vmax.f32 %v1676_v28, %v1348_v32 }
 0x3f4   :  { %v1677_v38 = vmax.f32 %v1675_v29, %v1347_v35 }
 0x3f8   :  { %v4691_v43 = vpop.f32.mrb[18].mxu0 }
 0x3f9   :  { %v1508_v60 = vmul.f32 0.5, %v4691_v43  ;;  %v1498_v61 = vpop.f32.mrb[19].mxu0 }
 0x3fa   :  { %v1507_v44 = vmul.f32 0.5, %v1498_v61 }
 0x3fb   :  { %v1680_v46 = vmax.f32 %v1678_v37, %v1508_v60 }
 0x3fc   :  { %v1679_v47 = vmax.f32 %v1677_v38, %v1507_v44 }
 0x400   :  { %v4713_v49 = vpop.f32.mrb[20].mxu0 }
 0x401   :  { %v1668_v51 = vmul.f32 0.5, %v4713_v49  ;;  %v1658_v54 = vpop.f32.mrb[21].mxu0 }
 0x402   :  { %v1667_v58 = vmul.f32 0.5, %v1658_v54 }
 0x403   :  { %v1682_v2 = vmax.f32 %v1680_v46, %v1668_v51 }
 0x404   :  { %v1681_v3 = vmax.f32 %v1679_v47, %v1667_v58 }
 0x405   :  { %v1684_v5 = vsub.f32 %v548_v55, %v1682_v2  ;;  %v1690_v8 = vsub.f32 %v708_v57, %v1682_v2  ;;  %v1696_v10 = vsub.f32 %v868_v6, %v1682_v2  ;;  %v1702_v11 = vsub.f32 %v1028_v14, %v1682_v2 }
 0x406   :  { %v1708_v13 = vsub.f32 %v1188_v23, %v1682_v2  ;;  %v1714_v16 = vsub.f32 %v1348_v32, %v1682_v2  ;;  %v1720_v19 = vsub.f32 %v1508_v60, %v1682_v2  ;;  %v1726_v20 = vsub.f32 %v1668_v51, %v1682_v2 }
 0x407   :  { %v1687_v22 = vmul.f32 1.442695, %v1684_v5  ;;  %v1693_v25 = vmul.f32 1.442695, %v1690_v8  ;;  %v1683_v28 = vsub.f32 %v5938_v62, %v1681_v3  ;;  %v1699_v29 = vmul.f32 1.442695, %v1696_v10 }
 0x408   :  { %v1689_v31 = vsub.f32 %v5940_v63, %v1681_v3  ;;  %v1705_v34 = vmul.f32 1.442695, %v1702_v11  ;;  %v1695_v37 = vsub.f32 %v5944_v9, %v1681_v3  ;;  %v1701_v55 = vsub.f32 %v1027_v17, %v1681_v3 }
 0x409   :  { %5380 = vpow2.f32 %v1687_v22  ;;  %v1711_v57 = vmul.f32 1.442695, %v1708_v13  ;;  %v1707_v6 = vsub.f32 %v1187_v26, %v1681_v3  ;;  %v1713_v14 = vsub.f32 %v1347_v35, %v1681_v3 }
 0x40a   :  { %5382 = vpow2.f32 %v1693_v25  ;;  %v1719_v23 = vsub.f32 %v1507_v44, %v1681_v3  ;;  %v1717_v32 = vmul.f32 1.442695, %v1714_v16  ;;  %v1725_v38 = vsub.f32 %v1667_v58, %v1681_v3 }
 0x40b   :  { %5384 = vpow2.f32 %v1699_v29  ;;  %v1685_v43 = vmul.f32 1.442695, %v1683_v28  ;;  %v1691_v60 = vmul.f32 1.442695, %v1689_v31  ;;  %v1723_v62 = vmul.f32 1.442695, %v1720_v19 }
 0x40c   :  { %5386 = vpow2.f32 %v1705_v34  ;;  %v1697_v63 = vmul.f32 1.442695, %v1695_v37  ;;  %v1729_v61 = vmul.f32 1.442695, %v1726_v20  ;;  %v1703_v46 = vmul.f32 1.442695, %v1701_v55 }
 0x40d   :  { %5388 = vpow2.f32 %v1711_v57  ;;  %v1709_v26 = vmul.f32 1.442695, %v1707_v6  ;;  %v1715_v47 = vmul.f32 1.442695, %v1713_v14  ;;  %v1721_v54 = vmul.f32 1.442695, %v1719_v23 }
 0x40e   :  { %5390 = vpow2.f32 %v1717_v32  ;;  %v1727_v5 = vmul.f32 1.442695, %v1725_v38 }
 0x40f   :  { %5392 = vpow2.f32 %v1685_v43 }
 0x410   :  { %5394 = vpow2.f32 %v1691_v60 }
 0x411   :  { %5396 = vpow2.f32 %v1723_v62 }
 0x412   :  { %5398 = vpow2.f32 %v1697_v63 }
 0x413   :  { %v5381_v9 = vpop.eup %5380  ;;  %5400 = vpow2.f32 %v1729_v61 }
 0x414   :  { %v5383_v17 = vpop.eup %5382  ;;  %5402 = vpow2.f32 %v1703_v46 }
 0x415   :  { %v1732_v35 = vadd.f32 %v5383_v17, %v5381_v9  ;;  %v5385_v44 = vpop.eup %5384  ;;  %5404 = vpow2.f32 %v1709_v26 }
 0x416   :  { %v5387_v51 = vpop.eup %5386  ;;  %5406 = vpow2.f32 %v1715_v47 }
 0x417   :  { %v1734_v49 = vadd.f32 %v5385_v44, %v1732_v35  ;;  %v5389_v58 = vpop.eup %5388  ;;  %5408 = vpow2.f32 %v1721_v54 }
 0x418   :  { %v5391_v3 = vpop.eup %5390  ;;  %5410 = vpow2.f32 %v1727_v5 }
 0x419   :  { %v1736_v2 = vadd.f32 %v5387_v51, %v1734_v49  ;;  %v5393_v8 = vpop.eup %5392 }
 0x41a   :  { %v5395_v11 = vpop.eup %5394 }
 0x41b   :  { %v1738_v10 = vadd.f32 %v5389_v58, %v1736_v2  ;;  %v5397_v13 = vpop.eup %5396  ;;  %v1731_v19 = vadd.f32 %v5395_v11, %v5393_v8 }
 0x41c   :  { %v5399_v20 = vpop.eup %5398 }
 0x41d   :  { %v1740_v16 = vadd.f32 %v5391_v3, %v1738_v10  ;;  %v5401_v22 = vpop.eup %5400  ;;  %v1733_v28 = vadd.f32 %v5399_v20, %v1731_v19 }
 0x41e   :  { %v5403_v29 = vpop.eup %5402 }
 0x41f   :  { %v1742_v25 = vadd.f32 %v5397_v13, %v1740_v16  ;;  %v1735_v34 = vadd.f32 %v5403_v29, %v1733_v28  ;;  %v5405_v37 = vpop.eup %5404 }
 0x420   :  { %v5407_v57 = vpop.eup %5406 }
 0x421   :  { %v1744_v31 = vadd.f32 %v5401_v22, %v1742_v25  ;;  %v1737_v55 = vadd.f32 %v5405_v37, %v1735_v34  ;;  %v5409_v14 = vpop.eup %5408 }
 0x422   :  { %v5411_v32 = vpop.eup %5410 }
 0x423   :  { %5412 = vrcp.f32 %v1744_v31  ;;  %v1739_v6 = vadd.f32 %v5407_v57, %v1737_v55 }
 0x425   :  { %v1741_v23 = vadd.f32 %v5409_v14, %v1739_v6 }
 0x427   :  { %v1743_v38 = vadd.f32 %v5411_v32, %v1741_v23 }
 0x429   :  { %5414 = vrcp.f32 %v1743_v38 }
 0x42d   :  { %v5413_v43 = vpop.eup %5412 }
 0x42e   :  { %v1774_v60 = vmul.f32 %v5413_v43, %v5401_v22  ;;  %v1748_v62 = vmul.f32 %v5413_v43, %v5381_v9  ;;  %v1750_v63 = vmul.f32 %v5413_v43, %v5383_v17  ;;  %v1754_v61 = vmul.f32 %v5413_v43, %v5385_v44 }
 0x42f   :  { %v1758_v46 = vmul.f32 %v5413_v43, %v5387_v51  ;;  %v1762_v26 = vmul.f32 %v5413_v43, %v5389_v58  ;;  %v1766_v35 = vmul.f32 %v5413_v43, %v5391_v3  ;;  %v1770_v47 = vmul.f32 %v5413_v43, %v5397_v13 }
 0x430   :  { %v1752_v49 = vadd.f32 %v1750_v63, %v1748_v62 }
 0x432   :  { %v1756_v54 = vadd.f32 %v1754_v61, %v1752_v49 }
 0x433   :  { %v5415_v5 = vpop.eup %5414 }
 0x434   :  { %v1760_v2 = vadd.f32 %v1758_v46, %v1756_v54  ;;  %v1747_v10 = vmul.f32 %v5415_v5, %v5393_v8  ;;  %v1749_v16 = vmul.f32 %v5415_v5, %v5395_v11  ;;  %v1753_v19 = vmul.f32 %v5415_v5, %v5399_v20  ;;  %v104_v20 = vld [vmem:[%s6257_s3 + $0x20] sm:$0xff] }
 0x435   :  { %v1757_v25 = vmul.f32 %v5415_v5, %v5403_v29  ;;  %v1761_v28 = vmul.f32 %v5415_v5, %v5405_v37  ;;  %v1765_v31 = vmul.f32 %v5415_v5, %v5407_v57  ;;  %v1769_v34 = vmul.f32 %v5415_v5, %v5409_v14  ;;  %v105_v29 = vld [vmem:[%s6257_s3 + $0x28] sm:$0xff]  ;;  %v4179_v57 = vld [vmem:[%s6261_s7 + $0x6] ss:$0 sm:$0xff] }
 0x436   :  { %v1773_v55 = vmul.f32 %v5415_v5, %v5411_v32  ;;  %v1751_v22 = vadd.f32 %v1749_v16, %v1747_v10  ;;  %v1764_v9 = vadd.f32 %v1762_v26, %v1760_v2  ;;  %v5181_v37 = vpack.c.bf16 %v105_v29, %v104_v20  ;;  %v106_v26 = vld [vmem:[%s6257_s3 + $0x30] sm:$0xff] }
 0x438   :  { %v1755_v17 = vadd.f32 %v1753_v19, %v1751_v22  ;;  %v1768_v44 = vadd.f32 %v1766_v35, %v1764_v9  ;;  %5182 = vmatprep.subr.bf16.mxu0 %v5181_v37  ;;  %v4183_v9 = vld [vmem:[%s6261_s7 + $0x3] ss:$0 sm:$0xff] }
 0x43a   :  { %v1759_v51 = vadd.f32 %v1757_v25, %v1755_v17  ;;  %v1772_v58 = vadd.f32 %v1770_v47, %v1768_v44  ;;  %v4182_v25 = vld [vmem:[%s6261_s7 + $0x2] ss:$0 sm:$0xff] }
 0x43c   :  { %v1763_v3 = vadd.f32 %v1761_v28, %v1759_v51  ;;  %v1776_v13 = vadd.f32 %v1774_v60, %v1772_v58 }
 0x43e   :  { %v1767_v6 = vadd.f32 %v1765_v31, %v1763_v3  ;;  %v1859_v23 = vmul.f32 %v5922_v40, %v1776_v13  ;;  %v32_v40 = vld [vmem:[%s6255_s1] sm:$0xff] }
 0x440   :  { %v1771_v38 = vadd.f32 %v1769_v34, %v1767_v6 }
 0x442   :  { %v1775_v8 = vadd.f32 %v1773_v55, %v1771_v38 }
 0x444   :  { %v1858_v11 = vmul.f32 %v5924_v41, %v1775_v8  ;;  %v33_v41 = vld [vmem:[%s6255_s1 + $0x8] sm:$0xff] }
 0x446   :  { %4733 = vmatprep.mubr.msk.f32.mxu0 %vm112_vm0, %v1858_v11 }
 0x447   :  { %4734 = vmatmul.mubr.msk.f32.vlgmr.msra.gmra.mrb[22].mxu0 %vm112_vm0, %v1859_v23 }
 0x448   :  { %4751 = vmatprep.mubr.msk.f32.mxu0 %vm2066_vm1, %v32_v40  ;;  %5184 = vmatpush3.bf16.msra.mxu0 %v5181_v37 }
 0x44b   :  { %4752 = vmatmul.mubr.msk.f32.vlgmr.msra.gmra.mrb[24].mxu0 %vm2066_vm1, %v33_v41 }
 0x44c   :  { %4758 = vmatprep.mubr.msk.f32.mxu0 %vm2066_vm1, %v32_v40 }
 0x51a   :  { %v4735_v14 = vpop.f32.mrb[22].mxu0 }
 0x51b   :  { %v1942_v32 = vadd.f32 %v4735_v14, %v4179_v57  ;;  %v1936_v43 = vpop.f32.mrb[23].mxu0 }
 0x51c   :  { %v1937_v60 = vadd.f32 %v4179_v57, %v1936_v43 }
 0x51d   :  { %v5973_v62 = vadd.f32 %v1942_v32, %v5556_v1  ;;  %v107_v1 = vld [vmem:[%s6257_s3 + $0x38] sm:$0xff] }
 0x51e   :  { %v5976_v63 = vadd.f32 %v1937_v60, %v5551_v0  ;;  %v5185_v35 = vpack.c.bf16 %v107_v1, %v106_v26  ;;  %v4753_v0 = vpop.f32.mrb[24].mxu0 }
 0x51f   :  { %v1950_v61 = vsel %vm112_vm0, %v5973_v62, 0.0  ;;  %v2139_v47 = vpop.f32.mrb[25].mxu0 }
 0x520   :  { %1951 = vadd.xlane.f32.xlu1 %v1950_v61  ;;  %v1947_v46 = vsel %vm112_vm0, %v5976_v63, 0.0  ;;  %5186 = vmatprep.subr.bf16.mxu0 %v5185_v35 }
 0x521   :  { %1948 = vadd.xlane.f32.xlu0 %v1947_v46  ;;  %5188 = vmatpush3.bf16.msra.mxu0 %v5185_v35 }
 0x522   :  { %5190 = vmatprep.subr.bf16.mxu0 %v5620_v50 }
 0x524   :  { %4759 = vmatmul.mubr.msk.f32.vlgmr.msra.gmra.mrb[26].mxu0 %vm2066_vm1, %v33_v41 }
 0x525   :  { %5192 = vmatpush3.bf16.msra.mxu0 %v5620_v50  ;;  %4769 = vmatprep.mubr.msk.f32.mxu0 %vm112_vm0, %v2139_v47 }
 0x526   :  { %5194 = vmatprep.subr.bf16.mxu0 %v5629_v53 }
 0x529   :  { %5196 = vmatpush3.bf16.msra.mxu0 %v5629_v53 }
 0x52a   :  { %5206 = vmatprep.subr.bf16.mxu0 %v5640_v56 }
 0x52c   :  { %4770 = vmatmul.mubr.msk.f32.vlgmr.msra.gmra.mrb[28].mxu0 %vm112_vm0, %v4753_v0 }
 0x52d   :  { %5208 = vmatpush3.bf16.msra.mxu0 %v5640_v56  ;;  %4791 = vmatprep.mubr.msk.f32.mxu0 %vm112_vm0, %v2139_v47 }
 0x52e   :  { %5210 = vmatprep.subr.bf16.mxu0 %v5667_v4 }
 0x531   :  { %5212 = vmatpush3.bf16.msra.mxu0 %v5667_v4 }
 0x532   :  { %5222 = vmatprep.subr.bf16.mxu0 %v5683_v7 }
 0x534   :  { %4792 = vmatmul.mubr.msk.f32.vlgmr.msra.gmra.mrb[30].mxu0 %vm112_vm0, %v4753_v0 }
 0x535   :  { %5224 = vmatpush3.bf16.msra.mxu0 %v5683_v7  ;;  %4813 = vmatprep.mubr.msk.f32.mxu0 %vm112_vm0, %v2139_v47 }
 0x536   :  { %5226 = vmatprep.subr.bf16.mxu0 %v5697_v12 }
 0x539   :  { %5228 = vmatpush3.bf16.msra.mxu0 %v5697_v12 }
 0x53a   :  { %5238 = vmatprep.subr.bf16.mxu0 %v5711_v15 }
 0x53c   :  { %4814 = vmatmul.mubr.msk.f32.vlgmr.msra.gmra.mrb[32].mxu0 %vm112_vm0, %v4753_v0 }
 0x53d   :  { %5240 = vmatpush3.bf16.msra.mxu0 %v5711_v15  ;;  %4835 = vmatprep.mubr.msk.f32.mxu0 %vm112_vm0, %v2139_v47 }
 0x53e   :  { %5242 = vmatprep.subr.bf16.mxu0 %v5721_v18 }
 0x541   :  { %5244 = vmatpush3.bf16.msra.mxu0 %v5721_v18 }
 0x542   :  { %5254 = vmatprep.subr.bf16.mxu0 %v5735_v21 }
 0x544   :  { %4836 = vmatmul.mubr.msk.f32.vlgmr.msra.gmra.mrb[34].mxu0 %vm112_vm0, %v4753_v0 }
 0x545   :  { %5256 = vmatpush3.bf16.msra.mxu0 %v5735_v21  ;;  %4857 = vmatprep.mubr.msk.f32.mxu0 %vm112_vm0, %v2139_v47 }
 0x546   :  { %5258 = vmatprep.subr.bf16.mxu0 %v5745_v24 }
 0x549   :  { %5260 = vmatpush3.bf16.msra.mxu0 %v5745_v24 }
 0x54a   :  { %5270 = vmatprep.subr.bf16.mxu0 %v5759_v27 }
 0x54c   :  { %4858 = vmatmul.mubr.msk.f32.vlgmr.msra.gmra.mrb[36].mxu0 %vm112_vm0, %v4753_v0 }
 0x54d   :  { %5272 = vmatpush3.bf16.msra.mxu0 %v5759_v27  ;;  %4879 = vmatprep.mubr.msk.f32.mxu0 %vm112_vm0, %v2139_v47  ;;  %v100_v27 = vld [vmem:[%s6257_s3] sm:$0xff] }
 0x54e   :  { %5274 = vmatprep.subr.bf16.mxu0 %v5769_v30 }
 0x551   :  { %5276 = vmatpush3.bf16.msra.mxu0 %v5769_v30  ;;  %v101_v30 = vld [vmem:[%s6257_s3 + $0x8] sm:$0xff] }
 0x552   :  { %5286 = vmatprep.subr.bf16.mxu0 %v5783_v33 }
 0x554   :  { %4880 = vmatmul.mubr.msk.f32.vlgmr.msra.gmra.mrb[38].mxu0 %vm112_vm0, %v4753_v0 }
 0x555   :  { %5288 = vmatpush3.bf16.msra.mxu0 %v5783_v33  ;;  %4901 = vmatprep.mubr.msk.f32.mxu0 %vm112_vm0, %v2139_v47  ;;  %v102_v33 = vld [vmem:[%s6257_s3 + $0x10] sm:$0xff] }
 0x556   :  { %5290 = vmatprep.subr.bf16.mxu0 %v5793_v36 }
 0x559   :  { %5292 = vmatpush3.bf16.msra.mxu0 %v5793_v36  ;;  %v5173_v36 = vpack.c.bf16 %v101_v30, %v100_v27  ;;  %v108_v27 = vld [vmem:[%s6257_s3 + $0x40] sm:$0xff]  ;;  %v109_v30 = vld [vmem:[%s6257_s3 + $0x48] sm:$0xff] }
 0x55a   :  { %5302 = vmatprep.subr.bf16.mxu0 %v5807_v39 }
 0x55b   :  { %5174 = vmatprep.subr.bf16.mxu1 %v5173_v36 }
 0x55c   :  { %4902 = vmatmul.mubr.msk.f32.vlgmr.msra.gmra.mrb[40].mxu0 %vm112_vm0, %v4753_v0  ;;  %5176 = vmatpush3.bf16.msra.mxu1 %v5173_v36  ;;  %v111_v36 = vld [vmem:[%s6257_s3 + $0x58] sm:$0xff] }
 0x55d   :  { %5304 = vmatpush3.bf16.msra.mxu0 %v5807_v39  ;;  %4923 = vmatprep.mubr.msk.f32.mxu0 %vm112_vm0, %v2139_v47  ;;  %v103_v39 = vld [vmem:[%s6257_s3 + $0x18] sm:$0xff] }
 0x55e   :  { %5306 = vmatprep.subr.bf16.mxu0 %v5817_v42 }
 0x561   :  { %5308 = vmatpush3.bf16.msra.mxu0 %v5817_v42  ;;  %v5177_v42 = vpack.c.bf16 %v103_v39, %v102_v33  ;;  %v5325_v33 = vpack.c.bf16 %v109_v30, %v108_v27 }
 0x562   :  { %5318 = vmatprep.subr.bf16.mxu0 %v5831_v45 }
 0x563   :  { %5178 = vmatprep.subr.bf16.mxu1 %v5177_v42 }
 0x564   :  { %4924 = vmatmul.mubr.msk.f32.vlgmr.msra.gmra.mrb[42].mxu0 %vm112_vm0, %v4753_v0  ;;  %5180 = vmatpush3.bf16.msra.mxu1 %v5177_v42 }
 0x565   :  { %5320 = vmatpush3.bf16.msra.mxu0 %v5831_v45  ;;  %5198 = vmatprep.subr.bf16.mxu1 %v5649_v59 }
 0x566   :  { %5322 = vmatprep.subr.bf16.mxu0 %v5841_v48 }
 0x569   :  { %5324 = vmatpush3.bf16.msra.mxu0 %v5841_v48 }
 0x5ad   :  { %v1952_v50 = vpop.xlane.xlu1 %1951 }
 0x5ae   :  { %v1954_v53 = vmul.f32 0.03125, %v1952_v50  ;;  %v1949_v56 = vpop.xlane.xlu0 %1948 }
 0x5af   :  { %v1953_v4 = vmul.f32 0.03125, %v1949_v56 }
 0x5b0   :  { %v1956_v7 = vsub.f32 %v5973_v62, %v1954_v53 }
 0x5b1   :  { %v1955_v12 = vsub.f32 %v5976_v63, %v1953_v4 }
 0x5b2   :  { %v1958_v15 = vmul.f32 %v1956_v7, %v1956_v7 }
 0x5b3   :  { %v1957_v18 = vmul.f32 %v1955_v12, %v1955_v12 }
 0x5b4   :  { %v1962_v21 = vsel %vm112_vm0, %v1958_v15, 0.0 }
 0x5b5   :  { %1963 = vadd.xlane.f32.xlu1 %v1962_v21  ;;  %v1959_v24 = vsel %vm112_vm0, %v1957_v18, 0.0 }
 0x5b6   :  { %1960 = vadd.xlane.f32.xlu0 %v1959_v24 }
 0x5f7   :  { %v4760_v45 = vpop.f32.mrb[26].mxu0 }
 0x5f8   :  { %v2214_v48 = vpop.f32.mrb[27].mxu0 }
 0x5f9   :  { %4945 = vmatprep.mubr.msk.f32.mxu0 %vm112_vm0, %v2214_v48 }
 0x5fa   :  { %4946 = vmatmul.mubr.msk.f32.vlgmr.msra.gmra.mrb[44].mxu0 %vm112_vm0, %v4760_v45 }
 0x5ff   :  { %v4771_v28 = vpop.f32.mrb[28].mxu0 }
 0x600   :  { %v2295_v55 = vpop.f32.mrb[29].mxu0 }
 0x607   :  { %v4793_v3 = vpop.f32.mrb[30].mxu0 }
 0x608   :  { %v2455_v13 = vpop.f32.mrb[31].mxu0 }
 0x60f   :  { %v4815_v6 = vpop.f32.mrb[32].mxu0 }
 0x610   :  { %v2615_v23 = vpop.f32.mrb[33].mxu0 }
 0x617   :  { %v4837_v38 = vpop.f32.mrb[34].mxu0 }
 0x618   :  { %v2775_v8 = vpop.f32.mrb[35].mxu0 }
 0x61f   :  { %v4859_v11 = vpop.f32.mrb[36].mxu0 }
 0x620   :  { %v2935_v20 = vpop.f32.mrb[37].mxu0 }
 0x627   :  { %v4881_v29 = vpop.f32.mrb[38].mxu0 }
 0x628   :  { %v3095_v40 = vpop.f32.mrb[39].mxu0 }
 0x62f   :  { %v4903_v37 = vpop.f32.mrb[40].mxu0 }
 0x630   :  { %v3255_v41 = vpop.f32.mrb[41].mxu0 }
 0x637   :  { %v4925_v57 = vpop.f32.mrb[42].mxu0 }
 0x638   :  { %v3415_v14 = vpop.f32.mrb[43].mxu0 }
 0x642   :  { %v1964_v49 = vpop.xlane.xlu1 %1963 }
 0x643   :  { %v1966_v54 = vmul.f32 0.03125, %v1964_v49  ;;  %v1961_v2 = vpop.xlane.xlu0 %1960 }
 0x644   :  { %v1965_v5 = vmul.f32 0.03125, %v1961_v2 }
 0x645   :  { %v1968_v10 = vadd.f32 1e-05, %v1966_v54 }
 0x646   :  { %v1967_v16 = vadd.f32 1e-05, %v1965_v5 }
 0x647   :  { %5416 = vrsqrt.f32 %v1968_v10 }
 0x648   :  { %5418 = vrsqrt.f32 %v1967_v16 }
 0x651   :  { %v5417_v19 = vpop.eup %5416 }
 0x652   :  { %v5419_v31 = vpop.eup %5418  ;;  %v1972_v34 = vmul.f32 %v5417_v19, %v1956_v7 }
 0x653   :  { %v1971_v22 = vmul.f32 %v5419_v31, %v1955_v12 }
 0x654   :  { %v1978_v17 = vmul.f32 %v4182_v25, %v1972_v34 }
 0x655   :  { %v1977_v44 = vmul.f32 %v4182_v25, %v1971_v22 }
 0x656   :  { %v1984_v58 = vadd.f32 %v4183_v9, %v1978_v17 }
 0x657   :  { %v1983_v51 = vadd.f32 %v4183_v9, %v1977_v44 }
 0x659   :  { %4744 = vmatprep.mubr.msk.f32.mxu1 %vm112_vm0, %v1983_v51 }
 0x65a   :  { %4745 = vmatmul.mubr.msk.f32.vlgmr.msra.gmra.mrb[18].mxu1 %vm112_vm0, %v1984_v58 }
 0x65b   :  { %5200 = vmatpush3.bf16.msra.mxu1 %v5649_v59 }
 0x65c   :  { %5202 = vmatprep.subr.bf16.mxu1 %v5858_v52 }
 0x65f   :  { %5204 = vmatpush3.bf16.msra.mxu1 %v5858_v52 }
 0x660   :  { %5214 = vmatprep.subr.bf16.mxu1 %v5649_v59 }
 0x6cd   :  { %v6072_v32 = vpop.f32.mrb[44].mxu0 }
 0x6ce   :  { %v6074_v43 = vpop.f32.mrb[45].mxu0 }
 0x72d   :  { %v4746_v60 = vpop.f32.mrb[18].mxu1 }
 0x72e   :  { %v2057_v61 = vpop.f32.mrb[19].mxu1  ;;  %v2305_v46 = vmul.f32 %v4771_v28, %v4746_v60  ;;  %v2465_v26 = vmul.f32 %v4793_v3, %v4746_v60  ;;  %v2625_v1 = vmul.f32 %v4815_v6, %v4746_v60  ;;  %v2785_v35 = vmul.f32 %v4837_v38, %v4746_v60 }
 0x72f   :  { %v2304_v0 = vmul.f32 %v2295_v55, %v2057_v61  ;;  %v2464_v47 = vmul.f32 %v2455_v13, %v2057_v61  ;;  %v2624_v50 = vmul.f32 %v2615_v23, %v2057_v61  ;;  %v2784_v53 = vmul.f32 %v2775_v8, %v2057_v61 }
 0x730   :  { %v2944_v56 = vmul.f32 %v2935_v20, %v2057_v61  ;;  %v2945_v4 = vmul.f32 %v4859_v11, %v4746_v60  ;;  %v3104_v7 = vmul.f32 %v3095_v40, %v2057_v61  ;;  %v3105_v12 = vmul.f32 %v4881_v29, %v4746_v60 }
 0x731   :  { %4780 = vmatprep.mubr.msk.f32.mxu1 %vm112_vm0, %v2304_v0  ;;  %v3264_v15 = vmul.f32 %v3255_v41, %v2057_v61  ;;  %v3265_v18 = vmul.f32 %v4903_v37, %v4746_v60  ;;  %v3424_v21 = vmul.f32 %v3415_v14, %v2057_v61  ;;  %v3425_v24 = vmul.f32 %v4925_v57, %v4746_v60 }
 0x732   :  { %4781 = vmatmul.mubr.msk.f32.vlgmr.msra.gmra.mrb[20].mxu1 %vm112_vm0, %v2305_v46 }
 0x733   :  { %5216 = vmatpush3.bf16.msra.mxu1 %v5649_v59  ;;  %4802 = vmatprep.mubr.msk.f32.mxu1 %vm112_vm0, %v2464_v47 }
 0x734   :  { %5218 = vmatprep.subr.bf16.mxu1 %v5858_v52 }
 0x737   :  { %5220 = vmatpush3.bf16.msra.mxu1 %v5858_v52 }
 0x738   :  { %5230 = vmatprep.subr.bf16.mxu1 %v5649_v59 }
 0x73a   :  { %4803 = vmatmul.mubr.msk.f32.vlgmr.msra.gmra.mrb[22].mxu1 %vm112_vm0, %v2465_v26 }
 0x73b   :  { %5232 = vmatpush3.bf16.msra.mxu1 %v5649_v59  ;;  %4824 = vmatprep.mubr.msk.f32.mxu1 %vm112_vm0, %v2624_v50 }
 0x73c   :  { %5234 = vmatprep.subr.bf16.mxu1 %v5858_v52 }
 0x73f   :  { %5236 = vmatpush3.bf16.msra.mxu1 %v5858_v52 }
 0x740   :  { %5246 = vmatprep.subr.bf16.mxu1 %v5649_v59 }
 0x742   :  { %4825 = vmatmul.mubr.msk.f32.vlgmr.msra.gmra.mrb[24].mxu1 %vm112_vm0, %v2625_v1 }
 0x743   :  { %5248 = vmatpush3.bf16.msra.mxu1 %v5649_v59  ;;  %4846 = vmatprep.mubr.msk.f32.mxu1 %vm112_vm0, %v2784_v53 }
 0x744   :  { %5250 = vmatprep.subr.bf16.mxu1 %v5858_v52 }
 0x747   :  { %5252 = vmatpush3.bf16.msra.mxu1 %v5858_v52 }
 0x748   :  { %5262 = vmatprep.subr.bf16.mxu1 %v5649_v59 }
 0x74a   :  { %4847 = vmatmul.mubr.msk.f32.vlgmr.msra.gmra.mrb[26].mxu1 %vm112_vm0, %v2785_v35 }
 0x74b   :  { %5264 = vmatpush3.bf16.msra.mxu1 %v5649_v59  ;;  %4868 = vmatprep.mubr.msk.f32.mxu1 %vm112_vm0, %v2944_v56 }
 0x74c   :  { %5266 = vmatprep.subr.bf16.mxu1 %v5858_v52 }
 0x74f   :  { %5268 = vmatpush3.bf16.msra.mxu1 %v5858_v52 }
 0x750   :  { %5278 = vmatprep.subr.bf16.mxu1 %v5649_v59 }
 0x752   :  { %4869 = vmatmul.mubr.msk.f32.vlgmr.msra.gmra.mrb[28].mxu1 %vm112_vm0, %v2945_v4 }
 0x753   :  { %5280 = vmatpush3.bf16.msra.mxu1 %v5649_v59  ;;  %4890 = vmatprep.mubr.msk.f32.mxu1 %vm112_vm0, %v3104_v7 }
 0x754   :  { %5282 = vmatprep.subr.bf16.mxu1 %v5858_v52 }
 0x757   :  { %5284 = vmatpush3.bf16.msra.mxu1 %v5858_v52 }
 0x758   :  { %5294 = vmatprep.subr.bf16.mxu1 %v5649_v59 }
 0x75a   :  { %4891 = vmatmul.mubr.msk.f32.vlgmr.msra.gmra.mrb[30].mxu1 %vm112_vm0, %v3105_v12 }
 0x75b   :  { %5296 = vmatpush3.bf16.msra.mxu1 %v5649_v59  ;;  %4912 = vmatprep.mubr.msk.f32.mxu1 %vm112_vm0, %v3264_v15 }
 0x75c   :  { %5298 = vmatprep.subr.bf16.mxu1 %v5858_v52 }
 0x75f   :  { %5300 = vmatpush3.bf16.msra.mxu1 %v5858_v52 }
 0x760   :  { %5310 = vmatprep.subr.bf16.mxu1 %v5649_v59 }
 0x762   :  { %4913 = vmatmul.mubr.msk.f32.vlgmr.msra.gmra.mrb[32].mxu1 %vm112_vm0, %v3265_v18 }
 0x763   :  { %5312 = vmatpush3.bf16.msra.mxu1 %v5649_v59  ;;  %4934 = vmatprep.mubr.msk.f32.mxu1 %vm112_vm0, %v3424_v21  ;;  %v110_v59 = vld [vmem:[%s6257_s3 + $0x50] sm:$0xff] }
 0x764   :  { %5314 = vmatprep.subr.bf16.mxu1 %v5858_v52 }
 0x767   :  { %5316 = vmatpush3.bf16.msra.mxu1 %v5858_v52  ;;  %v5329_v52 = vpack.c.bf16 %v111_v36, %v110_v59 }
 0x768   :  { %5326 = vmatprep.subr.bf16.mxu1 %v5325_v33 }
 0x76a   :  { %4935 = vmatmul.mubr.msk.f32.vlgmr.msra.gmra.mrb[34].mxu1 %vm112_vm0, %v3425_v24 }
 0x76b   :  { %5328 = vmatpush3.bf16.msra.mxu1 %v5325_v33 }
 0x76c   :  { %5330 = vmatprep.subr.bf16.mxu1 %v5329_v52 }
 0x76f   :  { %5332 = vmatpush3.bf16.msra.mxu1 %v5329_v52 }
 0x805   :  { %v4782_v39 = vpop.f32.mrb[20].mxu1 }
 0x806   :  { %v2378_v42 = vpop.f32.mrb[21].mxu1  ;;  %v2388_v48 = vmul.f32 0.5, %v4782_v39 }
 0x807   :  { %v6131_v2 = vmul.f32 0.5, %v2378_v42 }
 0x80d   :  { %v4804_v45 = vpop.f32.mrb[22].mxu1 }
 0x80e   :  { %v2548_v49 = vmul.f32 0.5, %v4804_v45  ;;  %v2538_v54 = vpop.f32.mrb[23].mxu1 }
 0x80f   :  { %v6133_v5 = vmul.f32 0.5, %v2538_v54 }
 0x810   :  { %v3510_v10 = vmax.f32 %v2388_v48, %v2548_v49 }
 0x811   :  { %v3509_v16 = vmax.f32 %v6131_v2, %v6133_v5 }
 0x815   :  { %v4826_v19 = vpop.f32.mrb[24].mxu1 }
 0x816   :  { %v2708_v25 = vmul.f32 0.5, %v4826_v19  ;;  %v2698_v28 = vpop.f32.mrb[25].mxu1 }
 0x817   :  { %v6137_v31 = vmul.f32 0.5, %v2698_v28 }
 0x818   :  { %v3512_v34 = vmax.f32 %v3510_v10, %v2708_v25 }
 0x819   :  { %v3511_v55 = vmax.f32 %v3509_v16, %v6137_v31 }
 0x81d   :  { %v4848_v22 = vpop.f32.mrb[26].mxu1 }
 0x81e   :  { %v2868_v9 = vmul.f32 0.5, %v4848_v22  ;;  %v2858_v17 = vpop.f32.mrb[27].mxu1 }
 0x81f   :  { %v2867_v44 = vmul.f32 0.5, %v2858_v17 }
 0x820   :  { %v3514_v51 = vmax.f32 %v3512_v34, %v2868_v9 }
 0x821   :  { %v3513_v58 = vmax.f32 %v3511_v55, %v2867_v44 }
 0x825   :  { %v4870_v3 = vpop.f32.mrb[28].mxu1 }
 0x826   :  { %v3028_v13 = vmul.f32 0.5, %v4870_v3  ;;  %v3018_v6 = vpop.f32.mrb[29].mxu1 }
 0x827   :  { %v3027_v23 = vmul.f32 0.5, %v3018_v6 }
 0x828   :  { %v3516_v38 = vmax.f32 %v3514_v51, %v3028_v13 }
 0x829   :  { %v3515_v8 = vmax.f32 %v3513_v58, %v3027_v23 }
 0x82d   :  { %v4892_v11 = vpop.f32.mrb[30].mxu1 }
 0x82e   :  { %v3188_v20 = vmul.f32 0.5, %v4892_v11  ;;  %v3178_v29 = vpop.f32.mrb[31].mxu1 }
 0x82f   :  { %v3187_v40 = vmul.f32 0.5, %v3178_v29 }
 0x830   :  { %v3518_v37 = vmax.f32 %v3516_v38, %v3188_v20 }
 0x831   :  { %v3517_v41 = vmax.f32 %v3515_v8, %v3187_v40 }
 0x835   :  { %v4914_v57 = vpop.f32.mrb[32].mxu1 }
 0x836   :  { %v3348_v14 = vmul.f32 0.5, %v4914_v57  ;;  %v3338_v60 = vpop.f32.mrb[33].mxu1 }
 0x837   :  { %v3347_v61 = vmul.f32 0.5, %v3338_v60 }
 0x838   :  { %v3520_v46 = vmax.f32 %v3518_v37, %v3348_v14 }
 0x839   :  { %v3519_v26 = vmax.f32 %v3517_v41, %v3347_v61 }
 0x83d   :  { %v4936_v1 = vpop.f32.mrb[34].mxu1 }
 0x83e   :  { %v3508_v35 = vmul.f32 0.5, %v4936_v1  ;;  %v3498_v0 = vpop.f32.mrb[35].mxu1 }
 0x83f   :  { %v3507_v47 = vmul.f32 0.5, %v3498_v0 }
 0x840   :  { %v3522_v50 = vmax.f32 %v3520_v46, %v3508_v35 }
 0x841   :  { %v3521_v53 = vmax.f32 %v3519_v26, %v3507_v47 }
 0x842   :  { %v3524_v56 = vsub.f32 %v2388_v48, %v3522_v50  ;;  %v3530_v4 = vsub.f32 %v2548_v49, %v3522_v50  ;;  %v3536_v7 = vsub.f32 %v2708_v25, %v3522_v50  ;;  %v3542_v12 = vsub.f32 %v2868_v9, %v3522_v50 }
 0x843   :  { %v3548_v15 = vsub.f32 %v3028_v13, %v3522_v50  ;;  %v3554_v18 = vsub.f32 %v3188_v20, %v3522_v50  ;;  %v3560_v21 = vsub.f32 %v3348_v14, %v3522_v50  ;;  %v3566_v24 = vsub.f32 %v3508_v35, %v3522_v50 }
 0x844   :  { %v3527_v27 = vmul.f32 1.442695, %v3524_v56  ;;  %v3533_v30 = vmul.f32 1.442695, %v3530_v4  ;;  %v3523_v59 = vsub.f32 %v6131_v2, %v3521_v53  ;;  %v3539_v33 = vmul.f32 1.442695, %v3536_v7 }
 0x845   :  { %v3529_v36 = vsub.f32 %v6133_v5, %v3521_v53  ;;  %v3545_v52 = vmul.f32 1.442695, %v3542_v12  ;;  %v3535_v39 = vsub.f32 %v6137_v31, %v3521_v53  ;;  %v3541_v42 = vsub.f32 %v2867_v44, %v3521_v53 }
 0x846   :  { %5420 = vpow2.f32 %v3527_v27  ;;  %v3551_v45 = vmul.f32 1.442695, %v3548_v15  ;;  %v3547_v48 = vsub.f32 %v3027_v23, %v3521_v53  ;;  %v3553_v49 = vsub.f32 %v3187_v40, %v3521_v53 }
 0x847   :  { %5422 = vpow2.f32 %v3533_v30  ;;  %v3559_v54 = vsub.f32 %v3347_v61, %v3521_v53  ;;  %v3557_v10 = vmul.f32 1.442695, %v3554_v18  ;;  %v3565_v16 = vsub.f32 %v3507_v47, %v3521_v53 }
 0x848   :  { %5424 = vpow2.f32 %v3539_v33  ;;  %v3525_v19 = vmul.f32 1.442695, %v3523_v59  ;;  %v3531_v25 = vmul.f32 1.442695, %v3529_v36  ;;  %v3563_v2 = vmul.f32 1.442695, %v3560_v21 }
 0x849   :  { %5426 = vpow2.f32 %v3545_v52  ;;  %v3537_v5 = vmul.f32 1.442695, %v3535_v39  ;;  %v3569_v28 = vmul.f32 1.442695, %v3566_v24  ;;  %v3543_v34 = vmul.f32 1.442695, %v3541_v42 }
 0x84a   :  { %5428 = vpow2.f32 %v3551_v45  ;;  %v3549_v22 = vmul.f32 1.442695, %v3547_v48  ;;  %v3555_v44 = vmul.f32 1.442695, %v3553_v49  ;;  %v3561_v3 = vmul.f32 1.442695, %v3559_v54 }
 0x84b   :  { %5430 = vpow2.f32 %v3557_v10  ;;  %v3567_v38 = vmul.f32 1.442695, %v3565_v16 }
 0x84c   :  { %5432 = vpow2.f32 %v3525_v19 }
 0x84d   :  { %5434 = vpow2.f32 %v3531_v25 }
 0x84e   :  { %5436 = vpow2.f32 %v3563_v2 }
 0x84f   :  { %5438 = vpow2.f32 %v3537_v5 }
 0x850   :  { %v5421_v31 = vpop.eup %5420  ;;  %5440 = vpow2.f32 %v3569_v28 }
 0x851   :  { %v5423_v55 = vpop.eup %5422  ;;  %5442 = vpow2.f32 %v3543_v34 }
 0x852   :  { %v3572_v9 = vadd.f32 %v5423_v55, %v5421_v31  ;;  %v5425_v17 = vpop.eup %5424  ;;  %5444 = vpow2.f32 %v3549_v22 }
 0x853   :  { %v5427_v58 = vpop.eup %5426  ;;  %5446 = vpow2.f32 %v3555_v44 }
 0x854   :  { %v3574_v51 = vadd.f32 %v5425_v17, %v3572_v9  ;;  %v5429_v13 = vpop.eup %5428  ;;  %5448 = vpow2.f32 %v3561_v3  ;;  %v4224_v3 = vld [vmem:[%s6261_s7 + $0x7] ss:$0 sm:$0xff] }
 0x855   :  { %v5431_v23 = vpop.eup %5430  ;;  %5450 = vpow2.f32 %v3567_v38 }
 0x856   :  { %v3576_v6 = vadd.f32 %v5427_v58, %v3574_v51  ;;  %v5433_v8 = vpop.eup %5432 }
 0x857   :  { %v5435_v20 = vpop.eup %5434 }
 0x858   :  { %v3578_v11 = vadd.f32 %v5429_v13, %v3576_v6  ;;  %v5437_v29 = vpop.eup %5436  ;;  %v3571_v37 = vadd.f32 %v5435_v20, %v5433_v8 }
 0x859   :  { %v5439_v41 = vpop.eup %5438 }
 0x85a   :  { %v3580_v40 = vadd.f32 %v5431_v23, %v3578_v11  ;;  %v5441_v57 = vpop.eup %5440  ;;  %v3573_v60 = vadd.f32 %v5439_v41, %v3571_v37 }
 0x85b   :  { %v5443_v61 = vpop.eup %5442 }
 0x85c   :  { %v3582_v14 = vadd.f32 %v5437_v29, %v3580_v40  ;;  %v3575_v26 = vadd.f32 %v5443_v61, %v3573_v60  ;;  %v5445_v1 = vpop.eup %5444 }
 0x85d   :  { %v5447_v0 = vpop.eup %5446 }
 0x85e   :  { %v3584_v46 = vadd.f32 %v5441_v57, %v3582_v14  ;;  %v3577_v35 = vadd.f32 %v5445_v1, %v3575_v26  ;;  %v5449_v50 = vpop.eup %5448  ;;  %v3827_v26 = vld [vmem:[%s6258_s4 + $0x10] sm:$0xff] }
 0x85f   :  { %v5451_v56 = vpop.eup %5450 }
 0x860   :  { %5452 = vrcp.f32 %v3584_v46  ;;  %v3579_v47 = vadd.f32 %v5447_v0, %v3577_v35  ;;  %v3826_v46 = vld [vmem:[%s6258_s4 + $0x8] sm:$0xff]  ;;  %v3828_v35 = vld [vmem:[%s6258_s4 + $0x18] sm:$0xff] }
 0x862   :  { %v3581_v53 = vadd.f32 %v5449_v50, %v3579_v47 }
 0x864   :  { %v3583_v4 = vadd.f32 %v5451_v56, %v3581_v53 }
 0x866   :  { %5454 = vrcp.f32 %v3583_v4 }
 0x86a   :  { %v5453_v7 = vpop.eup %5452 }
 0x86b   :  { %v3614_v12 = vmul.f32 %v5453_v7, %v5441_v57  ;;  %v3588_v15 = vmul.f32 %v5453_v7, %v5421_v31  ;;  %v3590_v18 = vmul.f32 %v5453_v7, %v5423_v55  ;;  %v3594_v21 = vmul.f32 %v5453_v7, %v5425_v17 }
 0x86c   :  { %v3598_v24 = vmul.f32 %v5453_v7, %v5427_v58  ;;  %v3602_v27 = vmul.f32 %v5453_v7, %v5429_v13  ;;  %v3606_v30 = vmul.f32 %v5453_v7, %v5431_v23  ;;  %v3610_v59 = vmul.f32 %v5453_v7, %v5437_v29 }
 0x86d   :  { %v3592_v33 = vadd.f32 %v3590_v18, %v3588_v15  ;;  %v4227_v15 = vld [vmem:[%s6261_s7 + $0x4] ss:$0 sm:$0xff] }
 0x86f   :  { %v3596_v36 = vadd.f32 %v3594_v21, %v3592_v33 }
 0x870   :  { %v5455_v39 = vpop.eup %5454 }
 0x871   :  { %v3600_v52 = vadd.f32 %v3598_v24, %v3596_v36  ;;  %v3587_v42 = vmul.f32 %v5455_v39, %v5433_v8  ;;  %v3589_v45 = vmul.f32 %v5455_v39, %v5435_v20  ;;  %v3593_v48 = vmul.f32 %v5455_v39, %v5439_v41 }
 0x872   :  { %v3597_v49 = vmul.f32 %v5455_v39, %v5443_v61  ;;  %v3601_v54 = vmul.f32 %v5455_v39, %v5445_v1  ;;  %v3605_v10 = vmul.f32 %v5455_v39, %v5447_v0  ;;  %v3609_v16 = vmul.f32 %v5455_v39, %v5449_v50  ;;  %v3825_v61 = vld [vmem:[%s6258_s4] sm:$0xff] }
 0x873   :  { %v3613_v19 = vmul.f32 %v5455_v39, %v5451_v56  ;;  %v3591_v25 = vadd.f32 %v3589_v45, %v3587_v42  ;;  %v3604_v2 = vadd.f32 %v3602_v27, %v3600_v52  ;;  %v5333_v1 = vpack.c.bf16 %v3826_v46, %v3825_v61  ;;  %v4228_v27 = vld [vmem:[%s6261_s7 + $0x5] ss:$0 sm:$0xff]  ;;  %v3969_v39 = vld [vmem:[%s6259_s5 + $0x8] sm:$0xff]  ;;  %v3970_v45 = vld [vmem:[%s6259_s5 + $0x10] sm:$0xff] }
 0x874   :  { %v5337_v0 = vpack.c.bf16 %v3828_v35, %v3827_v26  ;;  %v3968_v52 = vld [vmem:[%s6259_s5] sm:$0xff] }
 0x875   :  { %v3595_v5 = vadd.f32 %v3593_v48, %v3591_v25  ;;  %v3608_v28 = vadd.f32 %v3606_v30, %v3604_v2  ;;  %5334 = vmatprep.subr.bf16.mxu0 %v5333_v1  ;;  %v5341_v42 = vpack.c.bf16 %v3969_v39, %v3968_v52  ;;  %v3971_v48 = vld [vmem:[%s6259_s5 + $0x18] sm:$0xff] }
 0x876   :  { %5336 = vmatpush3.bf16.msra.mxu0 %v5333_v1  ;;  %v3975_v25 = vld [vmem:[%s6259_s5 + $0x38] sm:$0xff] }
 0x877   :  { %v3599_v34 = vadd.f32 %v3597_v49, %v3595_v5  ;;  %v3612_v31 = vadd.f32 %v3610_v59, %v3608_v28  ;;  %5338 = vmatprep.subr.bf16.mxu0 %v5337_v0  ;;  %5342 = vmatprep.subr.bf16.mxu1 %v5341_v42  ;;  %v5345_v49 = vpack.c.bf16 %v3971_v48, %v3970_v45  ;;  %v3976_v5 = vld [vmem:[%s6259_s5 + $0x40] sm:$0xff]  ;;  %v3977_v28 = vld [vmem:[%s6259_s5 + $0x48] sm:$0xff] }
 0x879   :  { %v3603_v55 = vadd.f32 %v3601_v54, %v3599_v34  ;;  %v3616_v22 = vadd.f32 %v3614_v12, %v3612_v31  ;;  %v3972_v54 = vld [vmem:[%s6259_s5 + $0x20] sm:$0xff]  ;;  %v5357_v34 = vpack.c.bf16 %v3977_v28, %v3976_v5  ;;  %v3978_v31 = vld [vmem:[%s6259_s5 + $0x50] sm:$0xff] }
 0x87a   :  { %5340 = vmatpush3.bf16.msra.mxu0 %v5337_v0 }
 0x87b   :  { %v3607_v9 = vadd.f32 %v3605_v10, %v3603_v55  ;;  %v3699_v17 = vmul.f32 %v6072_v32, %v3616_v22  ;;  %v3973_v10 = vld [vmem:[%s6259_s5 + $0x28] sm:$0xff]  ;;  %v3979_v55 = vld [vmem:[%s6259_s5 + $0x58] sm:$0xff] }
 0x87c   :  { %v5361_v22 = vpack.c.bf16 %v3979_v55, %v3978_v31 }
 0x87d   :  { %v3611_v44 = vadd.f32 %v3609_v16, %v3607_v9  ;;  %v5349_v16 = vpack.c.bf16 %v3973_v10, %v3972_v54  ;;  %v3980_v9 = vld [vmem:[%s6259_s5 + $0x60] sm:$0xff] }
 0x87f   :  { %v3615_v51 = vadd.f32 %v3613_v19, %v3611_v44  ;;  %v3974_v19 = vld [vmem:[%s6259_s5 + $0x30] sm:$0xff] }
 0x880   :  { %v5353_v2 = vpack.c.bf16 %v3975_v25, %v3974_v19 }
 0x881   :  { %v3698_v58 = vmul.f32 %v6074_v43, %v3615_v51  ;;  %v3982_v51 = vld [vmem:[%s6259_s5 + $0x70] sm:$0xff] }
 0x883   :  { %4956 = vmatprep.mubr.msk.f32.mxu1 %vm112_vm0, %v3698_v58  ;;  %v3983_v58 = vld [vmem:[%s6259_s5 + $0x78] sm:$0xff] }
 0x884   :  { %4957 = vmatmul.mubr.msk.f32.vlgmr.msra.gmra.mrb[36].mxu1 %vm112_vm0, %v3699_v17  ;;  %v3981_v17 = vld [vmem:[%s6259_s5 + $0x68] sm:$0xff] }
 0x885   :  { %5344 = vmatpush3.bf16.msra.mxu1 %v5341_v42  ;;  %v5365_v44 = vpack.c.bf16 %v3981_v17, %v3980_v9 }
 0x886   :  { %5346 = vmatprep.subr.bf16.mxu1 %v5345_v49 }
 0x889   :  { %5348 = vmatpush3.bf16.msra.mxu1 %v5345_v49 }
 0x88a   :  { %5350 = vmatprep.subr.bf16.mxu1 %v5349_v16 }
 0x88d   :  { %5352 = vmatpush3.bf16.msra.mxu1 %v5349_v16 }
 0x88e   :  { %5354 = vmatprep.subr.bf16.mxu1 %v5353_v2 }
 0x891   :  { %5356 = vmatpush3.bf16.msra.mxu1 %v5353_v2 }
 0x892   :  { %5358 = vmatprep.subr.bf16.mxu1 %v5357_v34 }
 0x895   :  { %5360 = vmatpush3.bf16.msra.mxu1 %v5357_v34 }
 0x896   :  { %5362 = vmatprep.subr.bf16.mxu1 %v5361_v22 }
 0x899   :  { %5364 = vmatpush3.bf16.msra.mxu1 %v5361_v22  ;;  %v4232_v22 = vld [vmem:[%s6261_s7 + $0x8] ss:$0 sm:$0xff] }
 0x89a   :  { %5366 = vmatprep.subr.bf16.mxu1 %v5365_v44 }
 0x89d   :  { %5368 = vmatpush3.bf16.msra.mxu1 %v5365_v44 }
 0x957   :  { %v4958_v13 = vpop.f32.mrb[36].mxu1 }
 0x958   :  { %v3782_v6 = vadd.f32 %v4958_v13, %v4224_v3  ;;  %v3776_v23 = vpop.f32.mrb[37].mxu1  ;;  %v4229_v13 = vld [vmem:[%s6261_s7 + $0x9] ss:$0 sm:$0xff]  ;;  %s5500_s7 = smov [#allocation2]  }
 0x959   :  { %v3777_v38 = vadd.f32 %v4224_v3, %v3776_v23  ;;  %v5369_v3 = vpack.c.bf16 %v3983_v58, %v3982_v51  ;;  %s4126_s0 = sshll.u32 %s5500_s7, 4  ;;  %s4127_s0 = int_to_ptr.vmem [resolvable:$true] %s4126_s0 }
 0x95a   :  { %v6151_v8 = vadd.f32 %v3782_v6, %v5973_v62  ;;  %s5476_s9 = scalar_lea.vmem %s4127_s0, 256  ;;  %p5481_p1 = scmp.lt.s32.totalorder %s4127_s0, %s4127_s0 }
 0x95b   :  { %v6154_v32 = vadd.f32 %v3777_v38, %v5976_v63  ;;  %5370 = vmatprep.subr.bf16.mxu1 %v5369_v3  ;;  %p5477_p0 = scmp.ne.s32.totalorder %s4127_s0, %s5476_s9  ;;  %p5482_p2 = scmp.lt.s32.totalorder %s5476_s9, %s5476_s9 }
 0x95c   :  { %v3790_v43 = vsel %vm112_vm0, %v6151_v8, 0.0  ;;  %5372 = vmatpush3.bf16.msra.mxu1 %v5369_v3 }
 0x95d   :  { %3791 = vadd.xlane.f32.xlu1 %v3790_v43  ;;  %v3787_v11 = vsel %vm112_vm0, %v6154_v32, 0.0  ;;  %p5483_p3 = por %p5482_p2, %p5481_p1 }
 0x95e   :  { %3788 = vadd.xlane.f32.xlu0 %v3787_v11 }
 0x95f   :  { %p5484_p4 = pnand %p5483_p3, %p5477_p0 }
 0x9ea   :  { %v3792_v20 = vpop.xlane.xlu1 %3791 }
 0x9eb   :  { %v3794_v29 = vmul.f32 0.03125, %v3792_v20  ;;  %v3789_v40 = vpop.xlane.xlu0 %3788 }
 0x9ec   :  { %v3793_v37 = vmul.f32 0.03125, %v3789_v40 }
 0x9ed   :  { %v3796_v41 = vsub.f32 %v6151_v8, %v3794_v29 }
 0x9ee   :  { %v3795_v62 = vsub.f32 %v6154_v32, %v3793_v37 }
 0x9ef   :  { %v3798_v57 = vmul.f32 %v3796_v41, %v3796_v41 }
 0x9f0   :  { %v3797_v14 = vmul.f32 %v3795_v62, %v3795_v62 }
 0x9f1   :  { %v3802_v63 = vsel %vm112_vm0, %v3798_v57, 0.0 }
 0x9f2   :  { %3803 = vadd.xlane.f32.xlu1 %v3802_v63  ;;  %v3799_v60 = vsel %vm112_vm0, %v3797_v14, 0.0 }
 0x9f3   :  { %3800 = vadd.xlane.f32.xlu0 %v3799_v60 }
 0xa7f   :  { %v3804_v47 = vpop.xlane.xlu1 %3803 }
 0xa80   :  { %v3806_v50 = vmul.f32 0.03125, %v3804_v47  ;;  %v3801_v53 = vpop.xlane.xlu0 %3800 }
 0xa81   :  { %v3805_v56 = vmul.f32 0.03125, %v3801_v53 }
 0xa82   :  { %v3808_v4 = vadd.f32 1e-05, %v3806_v50 }
 0xa83   :  { %v3807_v7 = vadd.f32 1e-05, %v3805_v56 }
 0xa84   :  { %5456 = vrsqrt.f32 %v3808_v4 }
 0xa85   :  { %5458 = vrsqrt.f32 %v3807_v7 }
 0xa8e   :  { %v5457_v12 = vpop.eup %5456 }
 0xa8f   :  { %v5459_v18 = vpop.eup %5458  ;;  %v3812_v21 = vmul.f32 %v5457_v12, %v3796_v41 }
 0xa90   :  { %v3811_v24 = vmul.f32 %v5459_v18, %v3795_v62 }
 0xa91   :  { %v3818_v30 = vmul.f32 %v4227_v15, %v3812_v21 }
 0xa92   :  { %v3817_v59 = vmul.f32 %v4227_v15, %v3811_v24 }
 0xa93   :  { %v3824_v36 = vadd.f32 %v4228_v27, %v3818_v30 }
 0xa94   :  { %v3823_v33 = vadd.f32 %v4228_v27, %v3817_v59 }
 0xa96   :  { %4967 = vmatprep.mubr.msk.f32.mxu0 %vm112_vm0, %v3823_v33 }
 0xa97   :  { %4968 = vmatmul.mubr.msk.f32.vlgmr.msra.gmra.mrb[46].mxu0 %vm112_vm0, %v3824_v36 }
 0xb6a   :  { %v4969_v6 = vpop.f32.mrb[46].mxu0 }
 0xb6b   :  { %v3911_v23 = vadd.f32 %v4969_v6, %v4229_v13  ;;  %v3905_v38 = vpop.f32.mrb[47].mxu0 }
 0xb6c   :  { %v3906_v43 = vadd.f32 %v4229_v13, %v3905_v38 }
 0xb6d   :  { %v3917_v11 = vmul.f32 0.70710677, %v3911_v23  ;;  %v3915_v34 = vmul.f32 0.5, %v3911_v23 }
 0xb6e   :  { %v3916_v20 = vmul.f32 0.70710677, %v3906_v43  ;;  %v3914_v5 = vmul.f32 0.5, %v3906_v43 }
 0xb6f   :  { %v3919_v29 = vand.u32 2147483647, %v3917_v11  ;;  %vm3959_vm2 = vcmp.lt.f32.partialorder %v3917_v11, 0.0 }
 0xb70   :  { %v3918_v40 = vand.u32 2147483647, %v3916_v20  ;;  %vm3958_vm3 = vcmp.lt.f32.partialorder %v3916_v20, 0.0 }
 0xb71   :  { %v3921_v37 = vmul.f32 0.3275911, %v3919_v29  ;;  %v3947_v14 = vsub.f32 0.0, %v3919_v29 }
 0xb72   :  { %v3920_v41 = vmul.f32 0.3275911, %v3918_v40  ;;  %v3946_v63 = vsub.f32 0.0, %v3918_v40 }
 0xb73   :  { %v3923_v62 = vadd.f32 1.0, %v3921_v37  ;;  %v3949_v61 = vmul.f32 %v3947_v14, %v3919_v29 }
 0xb74   :  { %v3922_v57 = vadd.f32 1.0, %v3920_v41  ;;  %v3948_v1 = vmul.f32 %v3946_v63, %v3918_v40 }
 0xb75   :  { %5460 = vrcp.f32 %v3923_v62  ;;  %v3952_v47 = vmul.f32 1.442695, %v3949_v61 }
 0xb76   :  { %5462 = vrcp.f32 %v3922_v57  ;;  %v3950_v56 = vmul.f32 1.442695, %v3948_v1 }
 0xb77   :  { %5464 = vpow2.f32 %v3952_v47 }
 0xb78   :  { %5466 = vpow2.f32 %v3950_v56 }
 0xb7f   :  { %v5461_v60 = vpop.eup %5460 }
 0xb80   :  { %v5463_v46 = vpop.eup %5462  ;;  %v3929_v26 = vmul.f32 1.0614054, %v5461_v60 }
 0xb81   :  { %v3928_v35 = vmul.f32 1.0614054, %v5463_v46  ;;  %v5465_v52 = vpop.eup %5464 }
 0xb82   :  { %v3931_v0 = vadd.f32 -1.4531521, %v3929_v26  ;;  %v5467_v42 = vpop.eup %5466 }
 0xb83   :  { %v3930_v50 = vadd.f32 -1.4531521, %v3928_v35 }
 0xb84   :  { %v3933_v53 = vmul.f32 %v5461_v60, %v3931_v0 }
 0xb85   :  { %v3932_v4 = vmul.f32 %v5463_v46, %v3930_v50 }
 0xb86   :  { %v3935_v7 = vadd.f32 1.4214138, %v3933_v53 }
 0xb87   :  { %v3934_v12 = vadd.f32 1.4214138, %v3932_v4 }
 0xb88   :  { %v3937_v15 = vmul.f32 %v5461_v60, %v3935_v7 }
 0xb89   :  { %v3936_v18 = vmul.f32 %v5463_v46, %v3934_v12 }
 0xb8a   :  { %v3939_v21 = vadd.f32 -0.28449672, %v3937_v15 }
 0xb8b   :  { %v3938_v24 = vadd.f32 -0.28449672, %v3936_v18 }
 0xb8c   :  { %v3941_v27 = vmul.f32 %v5461_v60, %v3939_v21 }
 0xb8d   :  { %v3940_v30 = vmul.f32 %v5463_v46, %v3938_v24 }
 0xb8e   :  { %v3943_v59 = vadd.f32 0.2548296, %v3941_v27 }
 0xb8f   :  { %v3942_v33 = vadd.f32 0.2548296, %v3940_v30 }
 0xb90   :  { %v3945_v36 = vmul.f32 %v5461_v60, %v3943_v59 }
 0xb91   :  { %v3944_v39 = vmul.f32 %v5463_v46, %v3942_v33 }
 0xb92   :  { %v3955_v45 = vmul.f32 %v5465_v52, %v3945_v36 }
 0xb93   :  { %v3954_v48 = vmul.f32 %v5467_v42, %v3944_v39 }
 0xb94   :  { %v3957_v49 = vsub.f32 1.0, %v3955_v45 }
 0xb95   :  { %v3956_v54 = vsub.f32 1.0, %v3954_v48 }
 0xb96   :  { %v3961_v10 = vsub.f32 0.0, %v3957_v49 }
 0xb97   :  { %v3960_v16 = vsub.f32 0.0, %v3956_v54 }
 0xb98   :  { %v3963_v19 = vsel %vm3959_vm2, %v3961_v10, %v3957_v49 }
 0xb99   :  { %v3965_v25 = vadd.f32 1.0, %v3963_v19  ;;  %v3962_v2 = vsel %vm3958_vm3, %v3960_v16, %v3956_v54 }
 0xb9a   :  { %v3964_v28 = vadd.f32 1.0, %v3962_v2 }
 0xb9b   :  { %v3967_v55 = vmul.f32 %v3965_v25, %v3915_v34 }
 0xb9c   :  { %v3966_v31 = vmul.f32 %v3964_v28, %v3914_v5 }
 0xb9e   :  { %5002 = vmatprep.mubr.f32.mxu1 %v3966_v31 }
 0xb9f   :  { %5003 = vmatmul.mubr.f32.vlgmr.msra.gmra.mrb[38].mxu1 %v3967_v55 }
 0xc72   :  { %v5004_v9 = vpop.f32.mrb[38].mxu1 }
 0xc73   :  { %v4060_v17 = vadd.f32 %v5004_v9, %v4232_v22  ;;  %v4054_v44 = vpop.f32.mrb[39].mxu1 }
 0xc74   :  { %v4055_v51 = vadd.f32 %v4232_v22, %v4054_v44 }
 0xc75   :  { %v4066_v58 = vmul.f32 0.70710677, %v4060_v17  ;;  %v4064_v45 = vmul.f32 0.5, %v4060_v17 }
 0xc76   :  { %v4065_v3 = vmul.f32 0.70710677, %v4055_v51  ;;  %v4063_v54 = vmul.f32 0.5, %v4055_v51 }
 0xc77   :  { %v4068_v13 = vand.u32 2147483647, %v4066_v58  ;;  %vm4108_vm4 = vcmp.lt.f32.partialorder %v4066_v58, 0.0 }
 0xc78   :  { %v4067_v6 = vand.u32 2147483647, %v4065_v3  ;;  %vm4107_vm5 = vcmp.lt.f32.partialorder %v4065_v3, 0.0 }
 0xc79   :  { %v4070_v38 = vmul.f32 0.3275911, %v4068_v13  ;;  %v4096_v20 = vsub.f32 0.0, %v4068_v13 }
 0xc7a   :  { %v4069_v43 = vmul.f32 0.3275911, %v4067_v6  ;;  %v4095_v29 = vsub.f32 0.0, %v4067_v6 }
 0xc7b   :  { %v4072_v11 = vadd.f32 1.0, %v4070_v38  ;;  %v4098_v37 = vmul.f32 %v4096_v20, %v4068_v13 }
 0xc7c   :  { %v4071_v23 = vadd.f32 1.0, %v4069_v43  ;;  %v4097_v57 = vmul.f32 %v4095_v29, %v4067_v6 }
 0xc7d   :  { %5468 = vrcp.f32 %v4072_v11  ;;  %v4101_v60 = vmul.f32 1.442695, %v4098_v37 }
 0xc7e   :  { %5470 = vrcp.f32 %v4071_v23  ;;  %v4099_v26 = vmul.f32 1.442695, %v4097_v57 }
 0xc7f   :  { %5472 = vpow2.f32 %v4101_v60 }
 0xc80   :  { %5474 = vpow2.f32 %v4099_v26 }
 0xc87   :  { %v5469_v40 = vpop.eup %5468 }
 0xc88   :  { %v5471_v41 = vpop.eup %5470  ;;  %v4078_v62 = vmul.f32 1.0614054, %v5469_v40 }
 0xc89   :  { %v4077_v14 = vmul.f32 1.0614054, %v5471_v41  ;;  %v5473_v21 = vpop.eup %5472 }
 0xc8a   :  { %v4080_v63 = vadd.f32 -1.4531521, %v4078_v62  ;;  %v5475_v27 = vpop.eup %5474 }
 0xc8b   :  { %v4079_v61 = vadd.f32 -1.4531521, %v4077_v14 }
 0xc8c   :  { %v4082_v46 = vmul.f32 %v5469_v40, %v4080_v63 }
 0xc8d   :  { %v4081_v1 = vmul.f32 %v5471_v41, %v4079_v61 }
 0xc8e   :  { %v4084_v35 = vadd.f32 1.4214138, %v4082_v46 }
 0xc8f   :  { %v4083_v0 = vadd.f32 1.4214138, %v4081_v1 }
 0xc90   :  { %v4086_v47 = vmul.f32 %v5469_v40, %v4084_v35 }
 0xc91   :  { %v4085_v50 = vmul.f32 %v5471_v41, %v4083_v0 }
 0xc92   :  { %v4088_v53 = vadd.f32 -0.28449672, %v4086_v47 }
 0xc93   :  { %v4087_v56 = vadd.f32 -0.28449672, %v4085_v50 }
 0xc94   :  { %v4090_v4 = vmul.f32 %v5469_v40, %v4088_v53 }
 0xc95   :  { %v4089_v7 = vmul.f32 %v5471_v41, %v4087_v56 }
 0xc96   :  { %v4092_v12 = vadd.f32 0.2548296, %v4090_v4 }
 0xc97   :  { %v4091_v15 = vadd.f32 0.2548296, %v4089_v7 }
 0xc98   :  { %v4094_v18 = vmul.f32 %v5469_v40, %v4092_v12 }
 0xc99   :  { %v4093_v24 = vmul.f32 %v5471_v41, %v4091_v15 }
 0xc9a   :  { %v4104_v30 = vmul.f32 %v5473_v21, %v4094_v18 }
 0xc9b   :  { %v4103_v59 = vmul.f32 %v5475_v27, %v4093_v24 }
 0xc9c   :  { %v4106_v33 = vsub.f32 1.0, %v4104_v30 }
 0xc9d   :  { %v4105_v36 = vsub.f32 1.0, %v4103_v59 }
 0xc9e   :  { %v4110_v52 = vsub.f32 0.0, %v4106_v33 }
 0xc9f   :  { %v4109_v39 = vsub.f32 0.0, %v4105_v36 }
 0xca0   :  { %v4112_v42 = vsel %vm4108_vm4, %v4110_v52, %v4106_v33 }
 0xca1   :  { %v4114_v48 = vadd.f32 1.0, %v4112_v42  ;;  %v4111_v49 = vsel %vm4107_vm5, %v4109_v39, %v4105_v36 }
 0xca2   :  { %v4113_v10 = vadd.f32 1.0, %v4111_v49 }
 0xca3   :  { %v4116_v16 = vmul.f32 %v4114_v48, %v4064_v45 }
 0xca4   :  { %v4115_v19 = vmul.f32 %v4113_v10, %v4063_v54 }
 0xca5   :  { %v4118_v25 = vadd.f32 %v4116_v16, %v6151_v8 }
 0xca6   :  { %v4117_v2 = vadd.f32 %v4115_v19, %v6154_v32 }
 0xca7   :  { %4120 = vst.msk [vmem:[#allocation2 + $0x8] sm:$0xff] %vm112_vm0, %v4118_v25 }
 0xca8   :  { %4119 = vst.msk [vmem:[#allocation2] sm:$0xff] %vm112_vm0, %v4117_v2 }
 0xca9   :  { %5487 = shalt.err (!%p5484_p4)
}
 0xcaa   :  { %s5488_s12 = scalar_lea.hbm %s6262_s8, 256 }
 0xcab   :  { %p5489_p5 = scmp.ne.s32.totalorder %s6262_s8, %s5488_s12  ;;  %p5492_p6 = scmp.lt.u32.totalorder %s5488_s12, %s6262_s8 }
 0xcad   :  { %p5494_p7 = pnand %p5492_p6, %p5489_p5 }
 0xcaf   :  { %5497 = shalt.err (!%p5494_p7)
}
 0xcb0   :  { %s5501_s16 = smov 128   ;;  %s5502_s1 = smov 8  }
 0xcb1   :  { %4132 = dma.vmem_to_hbm [thread:$0]  %s4127_s0, 256, %s6262_s8, [#allocation3], %s5501_s16, %s5501_s16, %s5502_s1  }
 0xcb2   :  { %5498 = dma.done.wait [#allocation3], 256  }
 0xcb3   :  { %5499 = vsyncadd [#allocation3], 4294967040 }
 0xcb4   :  { %4136 = vsyncpa [#allocation3], 1 }

</bundles_post_ra>
